<compile_context>
chip_gen: v5e
topology: v5e:2x2
jax: 0.10.0
libtpu: 0.0.40
codegen_flags: <defaults>
</compile_context>

<pallas_src>
import functools
import math

import jax
import jax.numpy as jnp
from jax import lax
from jax.experimental import pallas as pl
from jax.experimental.pallas import tpu as pltpu


# Target rows*Wp per matmul tile.  Kept small so the multi-tile path is
# exercised at the 16x16 test size; raise to ~1024-2048 (v6e: multiples of 256)
# for real resolutions.
_TARGET_M = 256


def _round_up(x, m):
    return (x + m - 1) // m * m


def _pick_h_tile(H, Wp, pool):
    """Largest H tile (even when pooling) dividing H with H_tile * Wp <= _TARGET_M."""
    step = 2 if pool else 1
    best = step
    for d in range(step, H + 1, step):
        if H % d == 0 and d * Wp <= _TARGET_M:
            best = d
    return best


# ----------------------------- fused conv kernel ------------------------------
def _conv_block_kernel(x_ref, w_ref, b_ref, o_ref, *, H_tile, W, Wp, KH, KW,
                       relu, pool):
    """3x3 VALID conv (+bias, opt. ReLU, opt. fused 2x2 max-pool) on one H tile.

    x_ref : (1, Hp, Wp, Cin)   whole padded image of one batch element (VMEM).
    o_ref : (1, H_tile(/2), W(/2), Cout)   output rows of this tile.

    Flat shift trick:
      out_flat[h*Wp + j] = sum_{kh,kw} x_flat[(h+kh)*Wp + j + kw] @ w[kh, kw]
    Columns j >= W are junk (they mix image rows) and are sliced off before the
    store; the wrapper adds one zero row so the shifted slices never go OOB.
    """
    t = pl.program_id(1)
    cin = x_ref.shape[-1]
    cout = o_ref.shape[-1]
    rows = H_tile + KH                       # KH-1 halo rows + 1 safety row
    M = H_tile * Wp

    x = x_ref[0, pl.ds(t * H_tile, rows)]    # (rows, Wp, Cin)
    xf = x.reshape(rows * Wp, cin)           # free: Wp is a multiple of 8

    acc = jnp.zeros((M, cout), jnp.float32)
    for kh in range(KH):                     # 9 big matmuls, f32 accumulation
        for kw in range(KW):
            off = kh * Wp + kw
            acc = acc + jnp.dot(xf[off:off + M, :], w_ref[kh, kw],
                                preferred_element_type=jnp.float32)
    acc = acc + b_ref[...]                   # (1, Cout) f32 bias broadcast
    if relu:
        acc = jnp.maximum(acc, 0.0)

    if pool:
        # Width pairs are adjacent flat rows (Wp is even): pack each pair into
        # the lane dim, max the channel halves, then max over row pairs (free
        # leading-dim split).  ReLU/pool commute, so ordering matches torch.
        yp = acc.reshape(H_tile, Wp // 2, 2 * cout)[:, :W // 2, :]
        yw = jnp.maximum(yp[:, :, :cout], yp[:, :, cout:])
        y = jnp.max(yw.reshape(H_tile // 2, 2, W // 2, cout), axis=1)
    else:
        y = acc.reshape(H_tile, Wp, cout)[:, :W, :]
    o_ref[0] = y.astype(o_ref.dtype)


def conv2d_pallas(x, w, b, *, relu, pool, out_dtype=None):
    """ReflectionPad2d(1) + 3x3 VALID conv (+bias, opt ReLU, opt fused 2x2 max-pool).

    x: (N, H, W, Cin) NHWC.  w: (3, 3, Cin, Cout) HWIO.  b: (Cout,) f32.
    """
    N, H, W, Cin = x.shape
    KH, KW, _, Cout = w.shape
    assert KH == 3 and KW == 3
    if pool:
        assert H % 2 == 0 and W % 2 == 0
    out_dtype = x.dtype if out_dtype is None else out_dtype

    # Reflection pad + alignment pad: width to a multiple of 8 (makes the
    # in-kernel flatten/unflatten reshapes layout-free), plus one zero row so
    # the flat shifted slices stay in bounds.
    Wp = _round_up(W + KW - 1, 8)
    Hp = H + KH
    xp = jnp.pad(x, ((0, 0), (1, 1), (1, 1), (0, 0)), mode="reflect")
    xp = jnp.pad(xp, ((0, 0), (0, Hp - (H + 2)), (0, Wp - (W + 2)), (0, 0)))

    H_tile = _pick_h_tile(H, Wp, pool)
    T = H // H_tile
    Ho, Wo = (H // 2, W // 2) if pool else (H, W)
    ot = H_tile // 2 if pool else H_tile

    kernel = functools.partial(_conv_block_kernel, H_tile=H_tile, W=W, Wp=Wp,
                               KH=KH, KW=KW, relu=relu, pool=pool)
    # TODO(synk): for very large images on v7x (64 MiB VMEM) switch the input
    # block to halo'd row tiles (pl.Element index_map or manual DMA) instead of
    # keeping the whole padded image VMEM-resident per batch element.
    return pl.pallas_call(
        kernel,
        out_shape=jax.ShapeDtypeStruct((N, Ho, Wo, Cout), out_dtype),
        grid=(N, T),
        in_specs=[
            pl.BlockSpec((1, Hp, Wp, Cin), lambda n, t: (n, 0, 0, 0)),
            pl.BlockSpec((KH, KW, Cin, Cout), lambda n, t: (0, 0, 0, 0)),
            pl.BlockSpec((1, Cout), lambda n, t: (0, 0)),
        ],
        out_specs=pl.BlockSpec((1, ot, Wo, Cout), lambda n, t: (n, t, 0, 0)),
        compiler_params=pltpu.CompilerParams(
            dimension_semantics=("parallel", "parallel")),
    )(xp, w.astype(x.dtype), b.reshape(1, Cout).astype(jnp.float32))


# ------------------------------- model glue -----------------------------------
def _fold_conv1_into_conv2(w1, b1, w2, b2):
    """Fold the 1x1 conv1 (no ReLU) into conv2 (exact under reflection padding)."""
    w = jnp.einsum("ic,hwco->hwio", w1[0, 0], w2)
    b = b2 + jnp.einsum("hwco,c->o", w2, b1)
    return w, b


_LAYERS = [  # (param index, fuse the following max-pool)
    ("2", False), ("3", True), ("4", False), ("5", True),
    ("6", False), ("7", False), ("8", False), ("9", True), ("10", False),
]


def encoder4_forward(x_nchw, p, *, use_bf16=True):
    """Pallas implementation of encoder4.forward.  Input/output are NCHW."""
    cdt = jnp.bfloat16 if use_bf16 else jnp.float32
    x = jnp.transpose(x_nchw, (0, 2, 3, 1)).astype(cdt)          # NCHW -> NHWC
    w2f, b2f = _fold_conv1_into_conv2(p["w1"], p["b1"], p["w2"], p["b2"])
    weights = dict(p)
    weights["w2"], weights["b2"] = w2f, b2f
    for i, (k, pool) in enumerate(_LAYERS):
        last = i == len(_LAYERS) - 1
        x = conv2d_pallas(x, weights[f"w{k}"], weights[f"b{k}"],
                          relu=True, pool=pool,
                          out_dtype=jnp.float32 if last else cdt)
    return jnp.transpose(x, (0, 3, 1, 2))                         # NHWC -> NCHW


_CONV_SHAPES = [
    (1, 1, 3, 3), (3, 3, 3, 64), (3, 3, 64, 64), (3, 3, 64, 128),
    (3, 3, 128, 128), (3, 3, 128, 256), (3, 3, 256, 256), (3, 3, 256, 256),
    (3, 3, 256, 256), (3, 3, 256, 512),
]


def init_params(key):
    """Deterministic PyTorch-default-style init (uniform +/- 1/sqrt(fan_in))."""
    params = {}
    for i, (kh, kw, cin, cout) in enumerate(_CONV_SHAPES, start=1):
        key, k_w, k_b = jax.random.split(key, 3)
        bound = 1.0 / math.sqrt(kh * kw * cin)
        params[f"w{i}"] = jax.random.uniform(k_w, (kh, kw, cin, cout),
                                             jnp.float32, -bound, bound)
        params[f"b{i}"] = jax.random.uniform(k_b, (cout,),
                                             jnp.float32, -bound, bound)
    return params


# --------------------------- pure-JAX references -------------------------------
def encoder4_ref(x_nchw, p, *, use_bf16=True):
    """Reference with the SAME numerics as the kernel (conv1 folding, bf16
    operands, f32 accumulation, f32 bias/ReLU/pool, bf16 inter-layer storage)."""
    cdt = jnp.bfloat16 if use_bf16 else jnp.float32
    x = jnp.transpose(x_nchw, (0, 2, 3, 1)).astype(cdt)

    def conv(x, w, b):
        xpad = jnp.pad(x, ((0, 0), (1, 1), (1, 1), (0, 0)), mode="reflect")
        y = lax.conv_general_dilated(
            xpad, w.astype(x.dtype), (1, 1), "VALID",
            dimension_numbers=("NHWC", "HWIO", "NHWC"),
            preferred_element_type=jnp.float32)
        return jnp.maximum(y + b.reshape(1, 1, 1, -1), 0.0)

    def pool(y):
        return lax.reduce_window(y, -jnp.inf, lax.max,
                                 (1, 2, 2, 1), (1, 2, 2, 1), "VALID")

    w2f, b2f = _fold_conv1_into_conv2(p["w1"], p["b1"], p["w2"], p["b2"])
    weights = dict(p)
    weights["w2"], weights["b2"] = w2f, b2f
    for i, (k, do_pool) in enumerate(_LAYERS):
        last = i == len(_LAYERS) - 1
        y = conv(x, weights[f"w{k}"], weights[f"b{k}"])
        if do_pool:
            y = pool(y)
        x = y if last else y.astype(cdt)
    return jnp.transpose(x, (0, 3, 1, 2))


def encoder4_ref_f32(x_nchw, p):
    """Module-faithful f32 reference (separate conv1, separate max-pools)."""
    x = jnp.transpose(x_nchw, (0, 2, 3, 1))

    def conv(x, w, b, relu, refl_pad):
        if refl_pad:
            x = jnp.pad(x, ((0, 0), (1, 1), (1, 1), (0, 0)), mode="reflect")
        y = lax.conv_general_dilated(
            x, w, (1, 1), "VALID",
            dimension_numbers=("NHWC", "HWIO", "NHWC")) + b.reshape(1, 1, 1, -1)
        return jnp.maximum(y, 0.0) if relu else y

    def pool(y):
        return lax.reduce_window(y, -jnp.inf, lax.max,
                                 (1, 2, 2, 1), (1, 2, 2, 1), "VALID")

    x = conv(x, p["w1"], p["b1"], False, False)
    x = conv(x, p["w2"], p["b2"], True, True)
    x = pool(conv(x, p["w3"], p["b3"], True, True))
    x = conv(x, p["w4"], p["b4"], True, True)
    x = pool(conv(x, p["w5"], p["b5"], True, True))
    x = conv(x, p["w6"], p["b6"], True, True)
    x = conv(x, p["w7"], p["b7"], True, True)
    x = conv(x, p["w8"], p["b8"], True, True)
    x = pool(conv(x, p["w9"], p["b9"], True, True))
    x = conv(x, p["w10"], p["b10"], True, True)
    return jnp.transpose(x, (0, 3, 1, 2))


if __name__ == "__main__":
    key = jax.random.PRNGKey(0)
    pkey, xkey = jax.random.split(key)
    params = init_params(pkey)

    # PyTorch-style NCHW input: batch=2, channels=3 (conv1 expects 3), spatial=16.
    x = jax.random.normal(xkey, (2, 3, 16, 16), dtype=jnp.float32)

    out = jax.block_until_ready(encoder4_forward(x, params))
    assert out.shape == (2, 512, 2, 2), out.shape

    # Numerics-matched reference (same bf16 operand / f32 accumulation recipe).
    ref = jax.block_until_ready(encoder4_ref(x, params))
    assert jnp.allclose(out, ref, atol=2e-2, rtol=2e-2), \
        float(jnp.max(jnp.abs(out - ref)))

    # Module-faithful f32 reference: loose tolerance covers bf16 operand error.
    ref32 = jax.block_until_ready(encoder4_ref_f32(x, params))
    assert jnp.allclose(out, ref32, atol=1e-1, rtol=1e-1), \
        float(jnp.max(jnp.abs(out - ref32)))

    print("KERNEL_OK")
</pallas_src>

<mosaic_0001>
module attributes {stable_mosaic.version = 11 : i64} {
  func.func @_conv_block_kernel(%arg0: i32, %arg1: i32, %arg2: memref<1x19x24x3xbf16, #tpu.memory_space<vmem>>, %arg3: memref<3x3x3x64xbf16, #tpu.memory_space<vmem>>, %arg4: memref<1x64xf32, #tpu.memory_space<vmem>>, %arg5: memref<1x8x16x64xbf16, #tpu.memory_space<vmem>>) attributes {dimension_semantics = [#tpu.dimension_semantics<parallel>, #tpu.dimension_semantics<parallel>], iteration_bounds = array<i64: 2, 2>, scalar_prefetch = 0 : i64, scratch_operands = 0 : i64, tpu.core_type = #tpu.core_type<tc>, window_params = [{transform_indices = @transform_0, window_bounds = array<i64: 1, 19, 24, 3>}, {pipeline_mode = #tpu.pipeline_mode<synchronous>, transform_indices = @transform_1, window_bounds = array<i64: 3, 3, 3, 64>}, {pipeline_mode = #tpu.pipeline_mode<synchronous>, transform_indices = @transform_2, window_bounds = array<i64: 1, 64>}, {transform_indices = @transform_3, window_bounds = array<i64: 1, 8, 16, 64>}]} {
    %c8_i32 = arith.constant 8 : i32
    %0 = arith.muli %arg1, %c8_i32 : i32
    %c0 = arith.constant 0 : index
    %1 = arith.index_cast %0 : i32 to index
    %c0_0 = arith.constant 0 : index
    %c0_1 = arith.constant 0 : index
    %2 = vector.load %arg2[%c0, %1, %c0_0, %c0_1] : memref<1x19x24x3xbf16, #tpu.memory_space<vmem>>, vector<1x11x24x3xbf16>
    %3 = vector.shape_cast %2 : vector<1x11x24x3xbf16> to vector<11x24x3xbf16>
    %4 = vector.shape_cast %3 : vector<11x24x3xbf16> to vector<264x3xbf16>
    %cst = arith.constant 0.000000e+00 : f32
    %5 = vector.broadcast %cst : f32 to vector<192x64xf32>
    %6 = vector.extract_strided_slice %4 {offsets = [0, 0], sizes = [192, 3], strides = [1, 1]} : vector<264x3xbf16> to vector<192x3xbf16>
    %c0_2 = arith.constant 0 : index
    %c0_3 = arith.constant 0 : index
    %c0_4 = arith.constant 0 : index
    %c0_5 = arith.constant 0 : index
    %7 = vector.load %arg3[%c0_2, %c0_3, %c0_4, %c0_5] : memref<3x3x3x64xbf16, #tpu.memory_space<vmem>>, vector<1x1x3x64xbf16>
    %8 = vector.shape_cast %7 : vector<1x1x3x64xbf16> to vector<3x64xbf16>
    %cst_6 = arith.constant dense<0.000000e+00> : vector<192x64xf32>
    %9 = tpu.matmul %6, %8, %cst_6 {dimension_numbers = #tpu.dot_dimension_numbers<[1], [0], [0], [1], [0, 0, 1, 1], [], []>} : vector<192x3xbf16>, vector<3x64xbf16>, vector<192x64xf32> -> vector<192x64xf32>
    %10 = arith.addf %5, %9 : vector<192x64xf32>
    %11 = vector.extract_strided_slice %4 {offsets = [1, 0], sizes = [192, 3], strides = [1, 1]} : vector<264x3xbf16> to vector<192x3xbf16>
    %c0_7 = arith.constant 0 : index
    %c1 = arith.constant 1 : index
    %c0_8 = arith.constant 0 : index
    %c0_9 = arith.constant 0 : index
    %12 = vector.load %arg3[%c0_7, %c1, %c0_8, %c0_9] : memref<3x3x3x64xbf16, #tpu.memory_space<vmem>>, vector<1x1x3x64xbf16>
    %13 = vector.shape_cast %12 : vector<1x1x3x64xbf16> to vector<3x64xbf16>
    %cst_10 = arith.constant dense<0.000000e+00> : vector<192x64xf32>
    %14 = tpu.matmul %11, %13, %cst_10 {dimension_numbers = #tpu.dot_dimension_numbers<[1], [0], [0], [1], [0, 0, 1, 1], [], []>} : vector<192x3xbf16>, vector<3x64xbf16>, vector<192x64xf32> -> vector<192x64xf32>
    %15 = arith.addf %10, %14 : vector<192x64xf32>
    %16 = vector.extract_strided_slice %4 {offsets = [2, 0], sizes = [192, 3], strides = [1, 1]} : vector<264x3xbf16> to vector<192x3xbf16>
    %c0_11 = arith.constant 0 : index
    %c2 = arith.constant 2 : index
    %c0_12 = arith.constant 0 : index
    %c0_13 = arith.constant 0 : index
    %17 = vector.load %arg3[%c0_11, %c2, %c0_12, %c0_13] : memref<3x3x3x64xbf16, #tpu.memory_space<vmem>>, vector<1x1x3x64xbf16>
    %18 = vector.shape_cast %17 : vector<1x1x3x64xbf16> to vector<3x64xbf16>
    %cst_14 = arith.constant dense<0.000000e+00> : vector<192x64xf32>
    %19 = tpu.matmul %16, %18, %cst_14 {dimension_numbers = #tpu.dot_dimension_numbers<[1], [0], [0], [1], [0, 0, 1, 1], [], []>} : vector<192x3xbf16>, vector<3x64xbf16>, vector<192x64xf32> -> vector<192x64xf32>
    %20 = arith.addf %15, %19 : vector<192x64xf32>
    %21 = vector.extract_strided_slice %4 {offsets = [24, 0], sizes = [192, 3], strides = [1, 1]} : vector<264x3xbf16> to vector<192x3xbf16>
    %c1_15 = arith.constant 1 : index
    %c0_16 = arith.constant 0 : index
    %c0_17 = arith.constant 0 : index
    %c0_18 = arith.constant 0 : index
    %22 = vector.load %arg3[%c1_15, %c0_16, %c0_17, %c0_18] : memref<3x3x3x64xbf16, #tpu.memory_space<vmem>>, vector<1x1x3x64xbf16>
    %23 = vector.shape_cast %22 : vector<1x1x3x64xbf16> to vector<3x64xbf16>
    %cst_19 = arith.constant dense<0.000000e+00> : vector<192x64xf32>
    %24 = tpu.matmul %21, %23, %cst_19 {dimension_numbers = #tpu.dot_dimension_numbers<[1], [0], [0], [1], [0, 0, 1, 1], [], []>} : vector<192x3xbf16>, vector<3x64xbf16>, vector<192x64xf32> -> vector<192x64xf32>
    %25 = arith.addf %20, %24 : vector<192x64xf32>
    %26 = vector.extract_strided_slice %4 {offsets = [25, 0], sizes = [192, 3], strides = [1, 1]} : vector<264x3xbf16> to vector<192x3xbf16>
    %c1_20 = arith.constant 1 : index
    %c1_21 = arith.constant 1 : index
    %c0_22 = arith.constant 0 : index
    %c0_23 = arith.constant 0 : index
    %27 = vector.load %arg3[%c1_20, %c1_21, %c0_22, %c0_23] : memref<3x3x3x64xbf16, #tpu.memory_space<vmem>>, vector<1x1x3x64xbf16>
    %28 = vector.shape_cast %27 : vector<1x1x3x64xbf16> to vector<3x64xbf16>
    %cst_24 = arith.constant dense<0.000000e+00> : vector<192x64xf32>
    %29 = tpu.matmul %26, %28, %cst_24 {dimension_numbers = #tpu.dot_dimension_numbers<[1], [0], [0], [1], [0, 0, 1, 1], [], []>} : vector<192x3xbf16>, vector<3x64xbf16>, vector<192x64xf32> -> vector<192x64xf32>
    %30 = arith.addf %25, %29 : vector<192x64xf32>
    %31 = vector.extract_strided_slice %4 {offsets = [26, 0], sizes = [192, 3], strides = [1, 1]} : vector<264x3xbf16> to vector<192x3xbf16>
    %c1_25 = arith.constant 1 : index
    %c2_26 = arith.constant 2 : index
    %c0_27 = arith.constant 0 : index
    %c0_28 = arith.constant 0 : index
    %32 = vector.load %arg3[%c1_25, %c2_26, %c0_27, %c0_28] : memref<3x3x3x64xbf16, #tpu.memory_space<vmem>>, vector<1x1x3x64xbf16>
    %33 = vector.shape_cast %32 : vector<1x1x3x64xbf16> to vector<3x64xbf16>
    %cst_29 = arith.constant dense<0.000000e+00> : vector<192x64xf32>
    %34 = tpu.matmul %31, %33, %cst_29 {dimension_numbers = #tpu.dot_dimension_numbers<[1], [0], [0], [1], [0, 0, 1, 1], [], []>} : vector<192x3xbf16>, vector<3x64xbf16>, vector<192x64xf32> -> vector<192x64xf32>
    %35 = arith.addf %30, %34 : vector<192x64xf32>
    %36 = vector.extract_strided_slice %4 {offsets = [48, 0], sizes = [192, 3], strides = [1, 1]} : vector<264x3xbf16> to vector<192x3xbf16>
    %c2_30 = arith.constant 2 : index
    %c0_31 = arith.constant 0 : index
    %c0_32 = arith.constant 0 : index
    %c0_33 = arith.constant 0 : index
    %37 = vector.load %arg3[%c2_30, %c0_31, %c0_32, %c0_33] : memref<3x3x3x64xbf16, #tpu.memory_space<vmem>>, vector<1x1x3x64xbf16>
    %38 = vector.shape_cast %37 : vector<1x1x3x64xbf16> to vector<3x64xbf16>
    %cst_34 = arith.constant dense<0.000000e+00> : vector<192x64xf32>
    %39 = tpu.matmul %36, %38, %cst_34 {dimension_numbers = #tpu.dot_dimension_numbers<[1], [0], [0], [1], [0, 0, 1, 1], [], []>} : vector<192x3xbf16>, vector<3x64xbf16>, vector<192x64xf32> -> vector<192x64xf32>
    %40 = arith.addf %35, %39 : vector<192x64xf32>
    %41 = vector.extract_strided_slice %4 {offsets = [49, 0], sizes = [192, 3], strides = [1, 1]} : vector<264x3xbf16> to vector<192x3xbf16>
    %c2_35 = arith.constant 2 : index
    %c1_36 = arith.constant 1 : index
    %c0_37 = arith.constant 0 : index
    %c0_38 = arith.constant 0 : index
    %42 = vector.load %arg3[%c2_35, %c1_36, %c0_37, %c0_38] : memref<3x3x3x64xbf16, #tpu.memory_space<vmem>>, vector<1x1x3x64xbf16>
    %43 = vector.shape_cast %42 : vector<1x1x3x64xbf16> to vector<3x64xbf16>
    %cst_39 = arith.constant dense<0.000000e+00> : vector<192x64xf32>
    %44 = tpu.matmul %41, %43, %cst_39 {dimension_numbers = #tpu.dot_dimension_numbers<[1], [0], [0], [1], [0, 0, 1, 1], [], []>} : vector<192x3xbf16>, vector<3x64xbf16>, vector<192x64xf32> -> vector<192x64xf32>
    %45 = arith.addf %40, %44 : vector<192x64xf32>
    %46 = vector.extract_strided_slice %4 {offsets = [50, 0], sizes = [192, 3], strides = [1, 1]} : vector<264x3xbf16> to vector<192x3xbf16>
    %c2_40 = arith.constant 2 : index
    %c2_41 = arith.constant 2 : index
    %c0_42 = arith.constant 0 : index
    %c0_43 = arith.constant 0 : index
    %47 = vector.load %arg3[%c2_40, %c2_41, %c0_42, %c0_43] : memref<3x3x3x64xbf16, #tpu.memory_space<vmem>>, vector<1x1x3x64xbf16>
    %48 = vector.shape_cast %47 : vector<1x1x3x64xbf16> to vector<3x64xbf16>
    %cst_44 = arith.constant dense<0.000000e+00> : vector<192x64xf32>
    %49 = tpu.matmul %46, %48, %cst_44 {dimension_numbers = #tpu.dot_dimension_numbers<[1], [0], [0], [1], [0, 0, 1, 1], [], []>} : vector<192x3xbf16>, vector<3x64xbf16>, vector<192x64xf32> -> vector<192x64xf32>
    %50 = arith.addf %45, %49 : vector<192x64xf32>
    %c0_45 = arith.constant 0 : index
    %c0_46 = arith.constant 0 : index
    %51 = vector.load %arg4[%c0_45, %c0_46] : memref<1x64xf32, #tpu.memory_space<vmem>>, vector<1x64xf32>
    %52 = vector.broadcast %51 : vector<1x64xf32> to vector<192x64xf32>
    %53 = arith.addf %50, %52 : vector<192x64xf32>
    %cst_47 = arith.constant 0.000000e+00 : f32
    %54 = vector.broadcast %cst_47 : f32 to vector<192x64xf32>
    %55 = arith.maximumf %53, %54 : vector<192x64xf32>
    %56 = vector.shape_cast %55 : vector<192x64xf32> to vector<8x24x64xf32>
    %57 = vector.extract_strided_slice %56 {offsets = [0, 0, 0], sizes = [8, 16, 64], strides = [1, 1, 1]} : vector<8x24x64xf32> to vector<8x16x64xf32>
    %58 = arith.truncf %57 : vector<8x16x64xf32> to vector<8x16x64xbf16>
    %c0_48 = arith.constant 0 : index
    %c0_49 = arith.constant 0 : index
    %c0_50 = arith.constant 0 : index
    %c0_51 = arith.constant 0 : index
    %59 = vector.load %arg5[%c0_48, %c0_49, %c0_50, %c0_51] : memref<1x8x16x64xbf16, #tpu.memory_space<vmem>>, vector<1x8x16x64xbf16>
    %60 = vector.shape_cast %59 : vector<1x8x16x64xbf16> to vector<8x16x64xbf16>
    %61 = vector.shape_cast %58 : vector<8x16x64xbf16> to vector<1x8x16x64xbf16>
    tpu.vector_store %arg5[%c0_48, %c0_49, %c0_50, %c0_51], %61 {strides = array<i32>} : memref<1x8x16x64xbf16, #tpu.memory_space<vmem>>, vector<1x8x16x64xbf16>,
    return
  }
  func.func @transform_0(%arg0: i32, %arg1: i32) -> (i32, i32, i32, i32) {
    %c0_i32 = arith.constant 0 : i32
    %c0_i32_0 = arith.constant 0 : i32
    %c0_i32_1 = arith.constant 0 : i32
    %c0_i32_2 = arith.constant 0 : i32
    return %arg0, %c0_i32, %c0_i32_0, %c0_i32_1 : i32, i32, i32, i32
  }
  func.func @transform_1(%arg0: i32, %arg1: i32) -> (i32, i32, i32, i32) {
    %c0_i32 = arith.constant 0 : i32
    %c0_i32_0 = arith.constant 0 : i32
    %c0_i32_1 = arith.constant 0 : i32
    %c0_i32_2 = arith.constant 0 : i32
    %c0_i32_3 = arith.constant 0 : i32
    return %c0_i32, %c0_i32_0, %c0_i32_1, %c0_i32_2 : i32, i32, i32, i32
  }
  func.func @transform_2(%arg0: i32, %arg1: i32) -> (i32, i32) {
    %c0_i32 = arith.constant 0 : i32
    %c0_i32_0 = arith.constant 0 : i32
    %c0_i32_1 = arith.constant 0 : i32
    return %c0_i32, %c0_i32_0 : i32, i32
  }
  func.func @transform_3(%arg0: i32, %arg1: i32) -> (i32, i32, i32, i32) {
    %c0_i32 = arith.constant 0 : i32
    %c0_i32_0 = arith.constant 0 : i32
    %c0_i32_1 = arith.constant 0 : i32
    return %arg0, %arg1, %c0_i32, %c0_i32_0 : i32, i32, i32, i32
  }
}

</mosaic_0001>

<bundles_post_ra>
// kernel: tpu_custom_call.1
= control target key start
LH: loop header
LB: loop body
LE: loop exit
PB: predicated region body
PF: predicated region fallthrough
CT: control target
= control target key end

     0   :  { %8 = vsyncpa [#allocation3], 0  ;;  %s2961_s0 = inlined_call_operand.vmem [shape: bf16[2,19,24,3], index: 0, kind: input, shape index: {}]   ;;  %s2962_s1 = inlined_call_operand.vmem [shape: bf16[3,3,3,64], index: 1, kind: input, shape index: {}]   ;;  %s2963_s2 = inlined_call_operand.vmem [shape: f32[1,64], index: 2, kind: input, shape index: {}]   ;;  %s2964_s3 = inlined_call_operand.hbm [shape: bf16[2,16,16,64], index: 3, kind: output, shape index: {}]  }
   0x1   :  { %10 = vsyncpa [#allocation3 + $0x1], 0  ;;  %s2184_s12 = smov 0   ;;  %s2186_s13 = smov 0  }
   0x2   :  { %s2188_s14 = smov 0   ;;  %s2190_s15 = smov 0  }
   0x3   :  { %s2192_s16 = smov 0   ;;  %s2194_s17 = smov 0  }
   0x4   :  { %s2196_s18 = smov 0   ;;  %s2198_s19 = smov 0  }
   0x5 LB: > { %s1699_s20 = sadd.s32 4294967295, %s2159_s19   ;;  %s1700_s21 = sadd.s32 4294967294, %s2159_s19   ;;  %s2159_s19 = sphi %s2198_s19, %s16_s19   ;;  %s2155_s18 = sphi %s2196_s18, %s3009_s18   ;;  %s2151_s17 = sphi %s2194_s17, %s3008_s17   ;;  %s2147_s16 = sphi %s2192_s16, %s3007_s16   ;;  %s2143_s15 = sphi %s2190_s15, %s3006_s15   ;;  %s2139_s14 = sphi %s2188_s14, %s3005_s14   ;;  %s2135_s13 = sphi %s2186_s13, %s3004_s13   ;;  %s2131_s12 = sphi %s2184_s12, %s3003_s12  }
   0x6   : > { %s25_s22 = sadd.s32 1, %s2151_s17  ;;  %s28_s23 = sadd.s32 1, %s2155_s18 }
   0x7   : > { %p26_p0 = scmp.ge.s32.totalorder %s25_s22, 2  ;;  %p115_p1 = scmp.ne.s32.totalorder %s2139_s14, %s2135_s13 }
   0x8   : > { %p116_p2 = scmp.eq.s32.totalorder %s1699_s20, 3  ;;  %p121_p5 = scmp.ne.s32.totalorder %s2135_s13, %s2131_s12 }
   0x9   : > { %s3011_s22 = smov (%p26_p0, %s25_s22), 0  ;;  %s3013_s23 = smov (!%p26_p0, %s28_s23), %s2155_s18 }
   0xa   : > { %s101_s24 = ssub.s32 %s2151_s17, %s3011_s22  ;;  %p2235_p3 = por %p116_p2, %p115_p1 }
   0xb   : > { %p30_p4 = scmp.ge.s32.totalorder %s3013_s23, 2  ;;  %p122_p6 = scmp.eq.s32.totalorder %s1700_s21, 3 }
   0xc   : > { %p1703_p7 = scmp.ge.s32.totalorder %s2159_s19, 1  ;;  %p154_p9 = scmp.lt.s32.totalorder %s2159_s19, 5 }
   0xd   : > { %s3015_s23 = smov (%p30_p4, %s3013_s23), 0  ;;  %p2244_p8 = por %p122_p6, %p121_p5 }
   0xe   : > { %s100_s27 = ssub.s32 %s2155_s18, %s3015_s23  ;;  %s105_s28 = sadd.s32 1, %s2139_s14 }
   0xf   : > { %s102_s29 = sor.u32 %s101_s24, %s100_s27  ;;  %p155_p10 = pnand %p1703_p7, %p154_p9 }
  0x10   : > { %p103_p11 = scmp.eq.s32.totalorder %s102_s29, 0 }
  0x11   : > { %158 = sbr.rel (%p155_p10) target bundleno = 602 (0x25a), region = 32 }
  0x12   : > { %s2253_s30 = scalar_select %p103_p11, %s2139_s14, %s105_s28  }
  0x16   : > { %v1709_v0 = vld [vmem:[%s2962_s1 + $0x2] sm:$0x3]  ;;  %vm424_vm0 = vcmask 1040384   ;;  %vm425_vm1 = vcmask 1041408   ;;  %p178_p12 = scmp.lt.s32.totalorder %s2147_s16, 1  ;;  %v2161_v1 = vmov 65535  }
  0x17   : > { %v426_v2 = vsel %vm424_vm0, 4294967295, %v2161_v1  ;;  %s1840_s6 = smul.u32 96, %s2143_s15  ;;  %v1738_v4 = vld [vmem:[%s2962_s1 + $0x4] sm:$0x3]  ;;  %v1751_v5 = vld [vmem:[%s2962_s1 + $0x6] sm:$0x3] }
  0x18   : > { %v2260_v3 = vsel %vm425_vm1, %v426_v2, 0  ;;  %s179_s7 = scalar_select %p178_p12, %s2147_s16, 1  ;;  %v220_v9 = vld [vmem:[%s2962_s1] sm:$0x3]  ;;  %v1764_v10 = vld [vmem:[%s2962_s1 + $0x8] sm:$0x3] }
  0x19   : > { %v429_v6 = vand.u32 %v1709_v0, %v2260_v3  ;;  %v645_v7 = vand.u32 %v1738_v4, %v2260_v3  ;;  %v779_v8 = vand.u32 %v1751_v5, %v2260_v3  ;;  %v517_v11 = vand.u32 %v2260_v3, %v220_v9  ;;  %s175_s29 = sand.u32 1, %s2135_s13  }
  0x1a   : > { %s1989_s28 = smul.u32 228, %s179_s7  ;;  %v988_v12 = vand.u32 %v1764_v10, %v2260_v3  ;;  %vm286_vm2 = vsmask.f32 7424  ;;  %vm387_vm3 = vcmask 23552   ;;  %vm582_vm4 = vcmask 1046528   ;;  %s1704_s4 = sshll.u32 %s175_s29, 6 }
  0x1b   : > { %1984 = vmatpush.bf16.msra.mxu1 %v429_v6  ;;  %1985 = vmatpush.bf16.msra.mxu2 %v429_v6  ;;  %vm1585_vm5 = vcmask 519168   ;;  %s1603_s21 = scalar_lea.sflag [#allocation3], %s175_s29 }
  0x1c   : > { %1986 = vmatpush.bf16.msra.mxu3 %v429_v6  ;;  %438 = vmatpush.bf16.msra.mxu0 %v429_v6  ;;  %s182_s5 = scalar_lea.vmem %s2961_s0, %s1989_s28 }
  0x1d   : > { %s2283_s8 = scalar_lea.vmem %s182_s5, %s1840_s6  ;;  %s2820_s5 = scalar_lea.vmem [#allocation2], %s1704_s4 }
  0x1e   : > { %v2286_v13 = vld [vmem:[%s2283_s8 + $0x18] sm:$0xff]   ;;  %v2289_v14 = vld [vmem:[%s2283_s8 + $0x20] sm:$0xff]   ;;  %v2292_v15 = vld [vmem:[%s2283_s8 + $0x30] sm:$0xff]   ;;  %s1836_s6 = sshll.u32 %s2147_s16, 5  ;;  %s1618_s11 = sshll.u32 %s2820_s5, 4  ;;  %s1619_s11 = int_to_ptr.vmem [resolvable:$true] %s1618_s11 }
  0x1f   : > { %654 = vmatpush.bf16.msrb.mxu2 %v645_v7  ;;  %526 = vmatpush.bf16.msrb.mxu1 %v517_v11  ;;  %v311_v16 = vshll.u32 %v2286_v13, 16  ;;  %v315_v17 = vshrl.u32 %v2286_v13, 16  ;;  %v319_v18 = vshll.u32 %v2289_v14, 16  ;;  %v2298_v19 = vld [vmem:[%s2283_s8 + $0x38] sm:$0xff]   ;;  %v335_v20 = vshll.u32 %v2292_v15, 16  ;;  %v2302_v21 = vld [vmem:[%s2283_s8 + $0x48] sm:$0xff]  }
  0x20   : > { %788 = vmatpush.bf16.msrb.mxu3 %v779_v8  ;;  %997 = vmatpush.bf16.msrb.mxu0 %v988_v12  ;;  %v339_v22 = vshrl.u32 %v2292_v15, 16  ;;  %v343_v23 = vshll.u32 %v2298_v19, 16  ;;  %v2307_v24 = vld [vmem:[%s2283_s8 + $0x50] sm:$0xff]   ;;  %v359_v25 = vshll.u32 %v2302_v21, 16  ;;  %v363_v26 = vshrl.u32 %v2302_v21, 16  ;;  %v2312_v27 = vld [vmem:[%s2283_s8] sm:$0xff] }
  0x21   : > { %v2314_v28 = vrot.slane %v311_v16, 1  ;;  %v321_v29 = vrot.slane %v319_v18, 1  ;;  %v2316_v30 = vrot.slane %v335_v20, 1  ;;  %v367_v31 = vshll.u32 %v2307_v24, 16  ;;  %v2320_v32 = vld [vmem:[%s2283_s8 + $0x8] sm:$0xff]   ;;  %v2350_v50 = vld [vmem:[%s2283_s8 + $0x40] sm:$0xff]  }
  0x22   : > { %v345_v33 = vrot.slane %v343_v23, 1  ;;  %v2322_v34 = vrot.slane %v359_v25, 1  ;;  %v288_v35 = vshrl.u32 %v2312_v27, 16  ;;  %v290_v36 = vshll.u32 %v2312_v27, 16  ;;  %v2347_v49 = vld [vmem:[%s2283_s8 + $0x28] sm:$0xff]   ;;  %v2354_v51 = vld [vmem:[%s2283_s8 + $0x58] sm:$0xff]  }
  0x23   : > { %v317_v37 = vor.u32 %v315_v17, %v2314_v28  ;;  %v341_v38 = vor.u32 %v339_v22, %v2316_v30  ;;  %v369_v39 = vrot.slane %v367_v31, 1  ;;  %v295_v40 = vshll.u32 %v2320_v32, 16  ;;  %v2361_v56 = vld [vmem:[%s2283_s8 + $0x10] sm:$0xff]   ;;  %v2368_v4 = vld [vmem:[%s2283_s8 + $0x60] sm:$0xff]   ;;  %v1790_v12 = vld [vmem:[%s2962_s1 + $0xc] sm:$0x3] }
  0x24   : > { %v365_v41 = vor.u32 %v363_v26, %v2322_v34  ;;  %v292_v42 = vrot.slane %v290_v36, 1  ;;  %v323_v52 = vshrl.u32 %v2289_v14, 16  ;;  %v327_v53 = vshll.u32 %v2347_v49, 16  ;;  %2978 = vst [vmem:[#allocation6_spill] sm:$0xff] %v2368_v4  ;;  %v1807_v18 = vld [vmem:[%s2962_s1 + $0xe] sm:$0x3] }
  0x25   : > { %v2331_v43 = vsel %vm286_vm2, %v317_v37, %v321_v29  ;;  %v2334_v44 = vsel %vm286_vm2, %v341_v38, %v345_v33  ;;  %v297_v45 = vrot.slane %v295_v40, 1  ;;  %v347_v54 = vshrl.u32 %v2298_v19, 16  ;;  %v1777_v20 = vld [vmem:[%s2962_s1 + $0xa] sm:$0x3]  ;;  %v1820_v22 = vld [vmem:[%s2962_s1 + $0x10] sm:$0x3] }
  0x26   : > { %1717 = vmatmul.msk.bf16.vlgmr.msra.gmra.mxu1 %vm387_vm3, %v2331_v43  ;;  %1720 = vmatmul.msk.bf16.vlgmr.msra.gmra.mxu2 %vm387_vm3, %v2334_v44  ;;  %v2341_v46 = vsel %vm286_vm2, %v365_v41, %v369_v39  ;;  %v293_v47 = vor.u32 %v292_v42, %v288_v35  ;;  %v351_v55 = vshll.u32 %v2350_v50, 16  ;;  %v371_v57 = vshrl.u32 %v2307_v24, 16 }
  0x27   : > { %2977 = vst [vmem:[#allocation5_spill] sm:$0xff] %v2341_v46  ;;  %1723 = vmatmul.msk.bf16.vlgmr.msra.gmra.mxu3 %vm387_vm3, %v2341_v46  ;;  %v375_v58 = vshll.u32 %v2354_v51, 16  ;;  %v299_v59 = vshrl.u32 %v2320_v32, 16  ;;  %v303_v60 = vshll.u32 %v2361_v56, 16  ;;  %v325_v61 = vor.u32 %v323_v52, %v321_v29 }
  0x28   : > { %v298_v48 = vsel %vm286_vm2, %v293_v47, %v297_v45  ;;  %v329_v62 = vrot.slane %v327_v53, 1  ;;  %v349_v63 = vor.u32 %v347_v54, %v345_v33  ;;  %v353_v0 = vrot.slane %v351_v55, 1 }
  0x29   : > { %1714 = vmatmul.msk.bf16.vlgmr.msra.gmra.mxu0 %vm387_vm3, %v298_v48  ;;  %v373_v1 = vor.u32 %v371_v57, %v369_v39  ;;  %v377_v2 = vrot.slane %v375_v58, 1  ;;  %v301_v5 = vor.u32 %v299_v59, %v297_v45  ;;  %v305_v6 = vrot.slane %v303_v60, 1  ;;  %v2434_v48 = vld [vmem:[%s2283_s8 + $0xc] sm:$0xff]  }
  0x2a   : > { %v2371_v7 = vsel %vm286_vm2, %v325_v61, %v329_v62  ;;  %v2374_v8 = vsel %vm286_vm2, %v349_v63, %v353_v0  ;;  %v2380_v10 = vunpack.c.l.b16 %v2368_v4  ;;  %v1229_v17 = vand.u32 %v1790_v12, %v2260_v3  ;;  %v2455_v61 = vld [vmem:[%s2283_s8 + $0x1c] sm:$0xff]  }
  0x2b   : > { %v2377_v9 = vsel %vm286_vm2, %v373_v1, %v377_v2  ;;  %v306_v11 = vsel %vm286_vm2, %v301_v5, %v305_v6  ;;  %v1352_v23 = vand.u32 %v1807_v18, %v2260_v3  ;;  %v1131_v25 = vand.u32 %v1777_v20, %v2260_v3 }
  0x2c   : > { %2979 = vst [vmem:[#allocation7_spill] sm:$0xff] %v2377_v9  ;;  %v2394_v16 = vpack.c.b16 %v2380_v10, %v2380_v10  ;;  %1238 = vmatpush.bf16.msra.mxu2 %v1229_v17  ;;  %v1454_v26 = vand.u32 %v1820_v22, %v2260_v3  ;;  %v331_v29 = vshrl.u32 %v2347_v49, 16  ;;  %v355_v31 = vshrl.u32 %v2350_v50, 16 }
  0x2d   : > { %v379_v33 = vshrl.u32 %v2354_v51, 16  ;;  %1361 = vmatpush.bf16.msra.mxu3 %v1352_v23  ;;  %1140 = vmatpush.bf16.msra.mxu1 %v1131_v25  ;;  %v307_v36 = vshrl.u32 %v2361_v56, 16  ;;  %v863_v52 = vshrl.u32 %v2434_v48, 16  ;;  %v583_v55 = vrot.slane %v2312_v27, 1  ;;  %v2483_v23 = vld [vmem:[%s2283_s8 + $0x2c] sm:$0xff]  }
  0x2e   : > { %v383_v35 = vshll.u32 %v2394_v16, 16  ;;  %1463 = vmatpush.bf16.msra.mxu0 %v1454_v26  ;;  %v333_v37 = vor.u32 %v331_v29, %v329_v62  ;;  %v357_v38 = vor.u32 %v355_v31, %v353_v0  ;;  %v876_v63 = vshll.u32 %v2455_v61, 16 }
  0x2f   : > { %v2415_v39 = vor.u32 %v379_v33, %v377_v2  ;;  %v309_v40 = vor.u32 %v307_v36, %v305_v6  ;;  %v586_v0 = vrot.slane %v2361_v56, 1  ;;  %v2469_v6 = vld [vmem:[%s2283_s8 + $0x24] sm:$0xff]   ;;  %v588_v17 = vrot.slane %v2286_v13, 1  ;;  %v2500_v36 = vld [vmem:[%s2283_s8 + $0x34] sm:$0xff]  }
  0x30   : > { %v385_v3 = vrot.slane %v383_v35, 1  ;;  %v2419_v41 = vsel %vm286_vm2, %v333_v37, %v2316_v30  ;;  %v2423_v42 = vsel %vm286_vm2, %v357_v38, %v2322_v34  ;;  %v2439_v30 = vld [vmem:[%s2283_s8 + $0x14] sm:$0xff]   ;;  %v865_v34 = vshll.u32 %v2434_v48, 16 }
  0x31   : > { %2980 = vst [vmem:[#allocation8_spill] sm:$0xff] %v2415_v39  ;;  %v314_v47 = vsel %vm286_vm2, %v309_v40, %v2314_v28  ;;  %v869_v54 = vshll.u32 %v2439_v30, 16  ;;  %v584_v28 = vrot.slane %v2320_v32, 1  ;;  %v873_v62 = vshrl.u32 %v2439_v30, 16 }
  0x32   : > { %v386_v45 = vsel %vm286_vm2, %v2415_v39, %v385_v3  ;;  %v867_v53 = vrot.slane %v865_v34, 1  ;;  %v883_v12 = vshll.u32 %v2469_v6, 16  ;;  %v589_v20 = vsel %vm582_vm4, %v586_v0, %v588_v17 }
  0x33   : > { %v871_v58 = vrot.slane %v869_v54, 1  ;;  %v585_v59 = vsel %vm582_vm4, %v583_v55, %v584_v28  ;;  %v587_v2 = vsel %vm582_vm4, %v584_v28, %v586_v0  ;;  %v887_v25 = vshrl.u32 %v2469_v6, 16 }
  0x34   : > { %v868_v57 = vor.u32 %v867_v53, %v863_v52  ;;  %v890_v26 = vshll.u32 %v2483_v23, 16  ;;  %v590_v29 = vrot.slane %v2289_v14, 1  ;;  %v894_v37 = vshrl.u32 %v2483_v23, 16  ;;  %v2517_v52 = vld [vmem:[%s2283_s8 + $0x3c] sm:$0xff]  }
  0x35   : > { %v875_v1 = vor.u32 %v873_v62, %v871_v58  ;;  %v897_v38 = vshll.u32 %v2500_v36, 16  ;;  %v592_v3 = vrot.slane %v2347_v49, 1  ;;  %v901_v53 = vshrl.u32 %v2500_v36, 16 }
  0x36   : > { %1718 = vmatmul.msk.bf16.gmra.mxu1 %vm387_vm3, %v2371_v7  ;;  %1721 = vmatmul.msk.bf16.gmra.mxu2 %vm387_vm3, %v2374_v8  ;;  %v872_v60 = vsel %vm286_vm2, %v868_v57, %v871_v58  ;;  %v2489_v33 = vsel %vm582_vm4, %v588_v17, %v590_v29  ;;  %v904_v54 = vshll.u32 %v2517_v52, 16  ;;  %v594_v55 = vrot.slane %v2292_v15, 1 }
  0x37   : > { %1724 = vmatmul.msk.bf16.gmra.mxu3 %vm387_vm3, %v2377_v9 }
  0x38   : > { %v906_v57 = vrot.slane %v904_v54, 1 }
  0x39   : > { %1715 = vmatmul.msk.bf16.gmra.mxu0 %vm387_vm3, %v306_v11  ;;  %v880_v11 = vshrl.u32 %v2455_v61, 16 }
  0x46   : > { %1719 = vmatmul.msk.bf16.gmra.mxu1 %vm387_vm3, %v2419_v41  ;;  %1722 = vmatmul.msk.bf16.gmra.mxu2 %vm387_vm3, %v2423_v42 }
  0x47   : > { %1725 = vmatmul.msk.bf16.gmra.mxu3 %vm387_vm3, %v386_v45  ;;  %v899_v45 = vrot.slane %v897_v38, 1 }
  0x49   : > { %1716 = vmatmul.msk.bf16.gmra.mxu0 %vm387_vm3, %v314_v47  ;;  %v2506_v47 = vsel %vm582_vm4, %v590_v29, %v592_v3  ;;  %v903_v28 = vor.u32 %v901_v53, %v899_v45 }
  0x4b   : > { %v907_v62 = vsel %vm286_vm2, %v903_v28, %v906_v57 }
  0x56   : > { %1726 = vmatmul.msk.bf16.vlgmr.msrb.gmra.mxu1 %vm387_vm3, %v2312_v27  ;;  %1739 = vmatmul.msk.bf16.vlgmr.msrb.gmra.mxu2 %vm387_vm3, %v585_v59  ;;  %v878_v27 = vrot.slane %v876_v63, 1  ;;  %v2525_v59 = vsel %vm582_vm4, %v592_v3, %v594_v55 }
  0x57   : > { %1752 = vmatmul.msk.bf16.vlgmr.msrb.gmra.mxu3 %vm387_vm3, %v2434_v48 }
  0x58   : > { %v879_v5 = vsel %vm286_vm2, %v875_v1, %v878_v27  ;;  %v882_v18 = vor.u32 %v880_v11, %v878_v27  ;;  %v2540_v1 = vld [vmem:[%s2283_s8 + $0x44] sm:$0xff]  }
  0x59   : > { %1765 = vmatmul.msk.bf16.vlgmr.msrb.gmra.mxu0 %vm387_vm3, %v872_v60  ;;  %v911_v11 = vshll.u32 %v2540_v1, 16  ;;  %v915_v3 = vshrl.u32 %v2540_v1, 16 }
  0x66   : > { %1727 = vmatmul.msk.bf16.gmra.mxu1 %vm387_vm3, %v2320_v32  ;;  %1740 = vmatmul.msk.bf16.gmra.mxu2 %vm387_vm3, %v587_v2  ;;  %v885_v32 = vrot.slane %v883_v12, 1  ;;  %v596_v12 = vrot.slane %v2298_v19, 1 }
  0x67   : > { %1753 = vmatmul.msk.bf16.gmra.mxu3 %vm387_vm3, %v2439_v30 }
  0x68   : > { %v886_v22 = vsel %vm286_vm2, %v882_v18, %v885_v32  ;;  %v889_v31 = vor.u32 %v887_v25, %v885_v32  ;;  %v2554_v25 = vsel %vm582_vm4, %v594_v55, %v596_v12 }
  0x69   : > { %1766 = vmatmul.msk.bf16.gmra.mxu0 %vm387_vm3, %v879_v5  ;;  %v908_v5 = vshrl.u32 %v2517_v52, 16 }
  0x6b   : > { %v910_v32 = vor.u32 %v908_v5, %v906_v57 }
  0x76   : > { %1728 = vmatmul.msk.bf16.gmra.mxu1 %vm387_vm3, %v2361_v56  ;;  %1741 = vmatmul.msk.bf16.gmra.mxu2 %vm387_vm3, %v589_v20  ;;  %v892_v56 = vrot.slane %v890_v26, 1  ;;  %v913_v20 = vrot.slane %v911_v11, 1 }
  0x77   : > { %1754 = vmatmul.msk.bf16.gmra.mxu3 %vm387_vm3, %v2455_v61 }
  0x78   : > { %v893_v35 = vsel %vm286_vm2, %v889_v31, %v892_v56  ;;  %v896_v40 = vor.u32 %v894_v37, %v892_v56  ;;  %v914_v29 = vsel %vm286_vm2, %v910_v32, %v913_v20  ;;  %v917_v54 = vor.u32 %v915_v3, %v913_v20 }
  0x79   : > { %1767 = vmatmul.msk.bf16.gmra.mxu0 %vm387_vm3, %v886_v22 }
  0x7a   : > { %v900_v34 = vsel %vm286_vm2, %v896_v40, %v899_v45  ;;  %v598_v45 = vrot.slane %v2350_v50, 1 }
  0x7c   : > { %v2581_v57 = vsel %vm582_vm4, %v596_v12, %v598_v45  ;;  %v2598_v12 = vld [vmem:[%s2283_s8 + $0x54] sm:$0xff]  }
  0x7d   : > { %2984 = vst [vmem:[#allocation12_spill] sm:$0xff] %v2598_v12 }
  0x86   : > { %1729 = vmatmul.msk.bf16.gmra.mxu1 %vm387_vm3, %v2286_v13  ;;  %1742 = vmatmul.msk.bf16.gmra.mxu2 %vm387_vm3, %v2489_v33 }
  0x87   : > { %1755 = vmatmul.msk.bf16.gmra.mxu3 %vm387_vm3, %v2469_v6 }
  0x89   : > { %1768 = vmatmul.msk.bf16.gmra.mxu0 %vm387_vm3, %v893_v35  ;;  %v2565_v35 = vld [vmem:[%s2283_s8 + $0x4c] sm:$0xff]  }
  0x8a   : > { %2981 = vst [vmem:[#allocation9_spill] sm:$0xff] %v2565_v35  ;;  %v918_v40 = vshll.u32 %v2565_v35, 16 }
  0x8c   : > { %v920_v55 = vrot.slane %v918_v40, 1 }
  0x8e   : > { %v921_v5 = vsel %vm286_vm2, %v917_v54, %v920_v55 }
  0x96   : > { %1730 = vmatmul.msk.bf16.gmra.mxu1 %vm387_vm3, %v2289_v14  ;;  %1743 = vmatmul.msk.bf16.gmra.mxu2 %vm387_vm3, %v2506_v47 }
  0x97   : > { %1756 = vmatmul.msk.bf16.gmra.mxu3 %vm387_vm3, %v2483_v23 }
  0x99   : > { %1769 = vmatmul.msk.bf16.gmra.mxu0 %vm387_vm3, %v900_v34 }
  0xa3   : > { %v2522_v58 = vpop.f32.mrf.mxu1 }
  0xa6   : > { %v440_v60 = vpop.f32.mrf.mxu0  ;;  %1731 = vmatmul.msk.bf16.gmra.mxu1 %vm387_vm3, %v2347_v49  ;;  %1744 = vmatmul.msk.bf16.gmra.mxu2 %vm387_vm3, %v2525_v59 }
  0xa7   : > { %1757 = vmatmul.msk.bf16.gmra.mxu3 %vm387_vm3, %v2500_v36 }
  0xa9   : > { %1770 = vmatmul.msk.bf16.gmra.mxu0 %vm387_vm3, %v907_v62  ;;  %v2535_v63 = vpop.f32.mrf.mxu2 }
  0xaa   : > { %v2537_v0 = vpop.f32.mrf.mxu3 }
  0xab   : > { %v2542_v27 = vpop.f32.mrf.mxu1 }
  0xae   : > { %v2544_v2 = vpop.f32.mrf.mxu0 }
  0xb1   : > { %v2549_v17 = vpop.f32.mrf.mxu2 }
  0xb2   : > { %v2551_v18 = vpop.f32.mrf.mxu3 }
  0xb3   : > { %v458_v22 = vpop.f32.mrf.mxu1 }
  0xb6   : > { %v445_v26 = vpop.f32.mrf.mxu0  ;;  %1732 = vmatmul.msk.bf16.gmra.mxu1 %vm387_vm3, %v2292_v15  ;;  %1745 = vmatmul.msk.bf16.gmra.mxu2 %vm387_vm3, %v2554_v25 }
  0xb7   : > { %1758 = vmatmul.msk.bf16.gmra.mxu3 %vm387_vm3, %v2517_v52  ;;  %v922_v26 = vshrl.u32 %v2565_v35, 16 }
  0xb9   : > { %1771 = vmatmul.msk.bf16.gmra.mxu0 %vm387_vm3, %v914_v29  ;;  %v471_v31 = vpop.f32.mrf.mxu2  ;;  %v925_v29 = vshll.u32 %v2598_v12, 16  ;;  %v924_v40 = vor.u32 %v922_v26, %v920_v55 }
  0xba   : > { %v484_v56 = vpop.f32.mrf.mxu3  ;;  %v600_v31 = vrot.slane %v2302_v21, 1 }
  0xbb   : > { %v2567_v37 = vpop.f32.mrf.mxu1  ;;  %v927_v54 = vrot.slane %v925_v29, 1 }
  0xbe   : > { %v2569_v38 = vpop.f32.mrf.mxu0 }
  0xc1   : > { %v2574_v34 = vpop.f32.mrf.mxu2 }
  0xc2   : > { %v2576_v53 = vpop.f32.mrf.mxu3 }
  0xc3   : > { %2982 = vst [vmem:[#allocation10_spill] sm:$0xff] %v2576_v53  ;;  %v2578_v28 = vpop.f32.mrf.mxu1 }
  0xc6   : > { %v2583_v62 = vpop.f32.mrf.mxu0  ;;  %1733 = vmatmul.msk.bf16.gmra.mxu1 %vm387_vm3, %v2298_v19  ;;  %1746 = vmatmul.msk.bf16.gmra.mxu2 %vm387_vm3, %v2581_v57 }
  0xc7   : > { %1759 = vmatmul.msk.bf16.gmra.mxu3 %vm387_vm3, %v2540_v1 }
  0xc9   : > { %1772 = vmatmul.msk.bf16.gmra.mxu0 %vm387_vm3, %v921_v5  ;;  %v2593_v11 = vpop.f32.mrf.mxu2  ;;  %v2604_v5 = vsel %vm582_vm4, %v598_v45, %v600_v31 }
  0xca   : > { %v2595_v32 = vpop.f32.mrf.mxu3 }
  0xcb   : > { %2983 = vst [vmem:[#allocation11_spill] sm:$0xff] %v2595_v32  ;;  %v464_v20 = vpop.f32.mrf.mxu1  ;;  %v1887_v32 = vunpack.c.h.b16 %v2354_v51 }
  0xcc   : > { %v928_v20 = vsel %vm286_vm2, %v924_v40, %v927_v54 }
  0xcd   : > { %v2616_v45 = vpack.c.b16 %v2380_v10, %v1887_v32 }
  0xce   : > { %v451_v22 = vpop.f32.mrf.mxu0 }
  0xcf   : > { %2985 = vst [vmem:[#allocation13_spill] sm:$0xff] %v2616_v45  ;;  %v932_v40 = vshll.u32 %v2616_v45, 16 }
  0xd1   : > { %v477_v56 = vpop.f32.mrf.mxu2 }
  0xd2   : > { %v490_v3 = vpop.f32.mrf.mxu3 }
  0xd3   : > { %v528_v39 = vpop.f32.mrf.mxu1  ;;  %v929_v3 = vshrl.u32 %v2598_v12, 16 }
  0xd4   : > { %v529_v4 = vadd.f32 %v528_v39, %v440_v60 }
  0xd5   : > { %v931_v32 = vor.u32 %v929_v3, %v927_v54 }
  0xd6   : > { %v999_v9 = vpop.f32.mrf.mxu0  ;;  %1734 = vmatmul.msk.bf16.gmra.mxu1 %vm387_vm3, %v2350_v50  ;;  %1747 = vmatmul.msk.bf16.gmra.mxu2 %vm387_vm3, %v2604_v5 }
  0xd7   : > { %1760 = vmatmul.msk.bf16.gmra.mxu3 %vm387_vm3, %v2565_v35  ;;  %v602_v35 = vrot.slane %v2307_v24, 1 }
  0xd9   : > { %1773 = vmatmul.msk.bf16.gmra.mxu0 %vm387_vm3, %v928_v20  ;;  %v656_v55 = vpop.f32.mrf.mxu2 }
  0xda   : > { %v708_v39 = vadd.f32 %v656_v55, %v529_v4  ;;  %v790_v60 = vpop.f32.mrf.mxu3  ;;  %v934_v4 = vrot.slane %v932_v40, 1  ;;  %v936_v40 = vshrl.u32 %v2616_v45, 16 }
  0xdb   : > { %v530_v22 = vpop.f32.mrf.mxu1 }
  0xdc   : > { %v842_v26 = vadd.f32 %v790_v60, %v708_v39  ;;  %v531_v29 = vadd.f32 %v530_v22, %v2544_v2  ;;  %v2625_v39 = vsel %vm582_vm4, %v600_v31, %v602_v35 }
  0xde   : > { %v1001_v56 = vpop.f32.mrf.mxu0  ;;  %v2621_v53 = vadd.f32 %v999_v9, %v842_v26  ;;  %v935_v9 = vsel %vm286_vm2, %v931_v32, %v934_v4 }
  0xe0   : > { %2986 = vst [vmem:[#allocation14_spill] sm:$0xff] %v2621_v53 }
  0xe1   : > { %v658_v20 = vpop.f32.mrf.mxu2 }
  0xe2   : > { %v709_v46 = vadd.f32 %v658_v20, %v531_v29  ;;  %v792_v10 = vpop.f32.mrf.mxu3 }
  0xe3   : > { %v533_v55 = vpop.f32.mrf.mxu1 }
  0xe4   : > { %v843_v2 = vadd.f32 %v792_v10, %v709_v46  ;;  %v2638_v46 = vld [vmem:[%s2283_s8 + $0x64] sm:$0xff]  }
  0xe5   : > { %v939_v20 = vshll.u32 %v2638_v46, 16  ;;  %v943_v53 = vshrl.u32 %v2638_v46, 16 }
  0xe6   : > { %v1004_v60 = vpop.f32.mrf.mxu0  ;;  %1735 = vmatmul.msk.bf16.gmra.mxu1 %vm387_vm3, %v2302_v21  ;;  %1748 = vmatmul.msk.bf16.gmra.mxu2 %vm387_vm3, %v2625_v39  ;;  %v2632_v22 = vadd.f32 %v1001_v56, %v843_v2  ;;  %v2644_v56 = vrot.slane %v2354_v51, 1  ;;  %v938_v2 = vor.u32 %v936_v40, %v934_v4 }
  0xe7   : > { %1761 = vmatmul.msk.bf16.gmra.mxu3 %vm387_vm3, %v2598_v12  ;;  %v941_v60 = vrot.slane %v939_v20, 1 }
  0xe8   : > { %2987 = vst [vmem:[#allocation15_spill] sm:$0xff] %v2632_v22 }
  0xe9   : > { %1774 = vmatmul.msk.bf16.gmra.mxu0 %vm387_vm3, %v935_v9  ;;  %v661_v54 = vpop.f32.mrf.mxu2  ;;  %v942_v4 = vsel %vm286_vm2, %v938_v2, %v941_v60 }
  0xea   : > { %v795_v31 = vpop.f32.mrf.mxu3  ;;  %v2648_v54 = vsel %vm582_vm4, %v602_v35, %v2644_v56 }
  0xeb   : > { %v534_v26 = vpop.f32.mrf.mxu1  ;;  %v2651_v31 = vld [vmem:[%s2283_s8 + $0x68] sm:$0xff]  }
  0xec   : > { %v535_v29 = vadd.f32 %v534_v26, %v2569_v38  ;;  %2988 = vst [vmem:[#allocation16_spill] sm:$0xff] %v2651_v31 }
  0xee   : > { %v1005_v3 = vpop.f32.mrf.mxu0 }
  0xf1   : > { %v662_v10 = vpop.f32.mrf.mxu2 }
  0xf2   : > { %v710_v32 = vadd.f32 %v662_v10, %v535_v29  ;;  %v796_v55 = vpop.f32.mrf.mxu3  ;;  %v1895_v29 = vunpack.c.h.b16 %v2651_v31 }
  0xf3   : > { %v537_v9 = vpop.f32.mrf.mxu1 }
  0xf4   : > { %v844_v38 = vadd.f32 %v796_v55, %v710_v32  ;;  %v538_v26 = vadd.f32 %v537_v9, %v2583_v62  ;;  %v2665_v10 = vpack.c.b16 %v1895_v29, %v1895_v29 }
  0xf6   : > { %v1008_v22 = vpop.f32.mrf.mxu0  ;;  %1736 = vmatmul.msk.bf16.gmra.mxu1 %vm387_vm3, %v2307_v24  ;;  %1749 = vmatmul.msk.bf16.gmra.mxu2 %vm387_vm3, %v2648_v54  ;;  %v2660_v40 = vadd.f32 %v1005_v3, %v844_v38  ;;  %v947_v2 = vshll.u32 %v2665_v10, 16  ;;  %v606_v3 = vrot.slane %v2394_v16, 1 }
  0xf7   : > { %1762 = vmatmul.msk.bf16.gmra.mxu3 %vm387_vm3, %v2616_v45  ;;  %v945_v45 = vor.u32 %v943_v53, %v941_v60 }
  0xf8   : > { %2989 = vst [vmem:[#allocation17_spill] sm:$0xff] %v2660_v40 }
  0xf9   : > { %1775 = vmatmul.msk.bf16.gmra.mxu0 %vm387_vm3, %v942_v4  ;;  %v665_v35 = vpop.f32.mrf.mxu2  ;;  %v949_v4 = vrot.slane %v947_v2, 1 }
  0xfa   : > { %v711_v62 = vadd.f32 %v665_v35, %v538_v26  ;;  %v799_v20 = vpop.f32.mrf.mxu3  ;;  %v607_v26 = vsel %vm582_vm4, %v2644_v56, %v606_v3 }
  0xfb   : > { %v539_v32 = vpop.f32.mrf.mxu1  ;;  %v950_v35 = vsel %vm286_vm2, %v945_v45, %v949_v4 }
  0xfc   : > { %v845_v55 = vadd.f32 %v799_v20, %v711_v62 }
  0xfe   : > { %v1010_v9 = vpop.f32.mrf.mxu0  ;;  %v2669_v31 = vadd.f32 %v1008_v22, %v845_v55  ;;  %v1069_v55 = vrot.slane %v2434_v48, 1 }
  0xff   : > { %v1070_v9 = vrot.slane %v2439_v30, 1 }
 0x101   : > { %v667_v38 = vpop.f32.mrf.mxu2 }
 0x102   : > { %v801_v40 = vpop.f32.mrf.mxu3 }
 0x103   : > { %v541_v12 = vpop.f32.mrf.mxu1 }
 0x104   : > { %v542_v16 = vadd.f32 %v541_v12, %v2522_v58  ;;  %v1071_v12 = vsel %vm582_vm4, %v1069_v55, %v1070_v9 }
 0x106   : > { %v1012_v29 = vpop.f32.mrf.mxu0  ;;  %1737 = vmatmul.msk.bf16.gmra.mxu1 %vm387_vm3, %v2354_v51  ;;  %1750 = vmatmul.msk.bf16.gmra.mxu2 %vm387_vm3, %v607_v26 }
 0x107   : > { %1763 = vmatmul.msk.bf16.gmra.mxu3 %vm387_vm3, %v2638_v46 }
 0x109   : > { %1776 = vmatmul.msk.bf16.gmra.mxu0 %vm387_vm3, %v950_v35  ;;  %v669_v53 = vpop.f32.mrf.mxu2 }
 0x10a   : > { %v712_v22 = vadd.f32 %v669_v53, %v542_v16  ;;  %v803_v60 = vpop.f32.mrf.mxu3  ;;  %v1072_v16 = vrot.slane %v2455_v61, 1 }
 0x10b   : > { %v543_v40 = vpop.f32.mrf.mxu1 }
 0x10c   : > { %v846_v62 = vadd.f32 %v803_v60, %v712_v22  ;;  %v544_v45 = vadd.f32 %v543_v40, %v2542_v27 }
 0x10e   : > { %v1014_v20 = vpop.f32.mrf.mxu0  ;;  %v2682_v32 = vadd.f32 %v1012_v29, %v846_v62  ;;  %v1073_v62 = vsel %vm582_vm4, %v1070_v9, %v1072_v16 }
 0x111   : > { %v671_v2 = vpop.f32.mrf.mxu2 }
 0x112   : > { %v713_v3 = vadd.f32 %v671_v2, %v544_v45  ;;  %v805_v38 = vpop.f32.mrf.mxu3 }
 0x113   : > { %v546_v58 = vpop.f32.mrf.mxu1 }
 0x114   : > { %v847_v4 = vadd.f32 %v805_v38, %v713_v3 }
 0x116   : > { %v1017_v26 = vpop.f32.mrf.mxu0  ;;  %1778 = vmatmul.msk.bf16.vlgmr.msra.gmra.mxu1 %vm387_vm3, %v1071_v12  ;;  %1795 = vmatmul.msk.bf16.vlgmr.msra.gmra.mxu2 %vm387_vm3, %v2286_v13  ;;  %v2691_v29 = vadd.f32 %v1014_v20, %v847_v4 }
 0x117   : > { %1808 = vmatmul.msk.bf16.vlgmr.msra.gmra.mxu3 %vm387_vm3, %v2331_v43 }
 0x119   : > { %1821 = vmatmul.msk.bf16.vlgmr.msra.gmra.mxu0 %vm387_vm3, %v2489_v33  ;;  %v674_v48 = vpop.f32.mrf.mxu2 }
 0x11a   : > { %v808_v30 = vpop.f32.mrf.mxu3 }
 0x11b   : > { %v547_v27 = vpop.f32.mrf.mxu1 }
 0x11c   : > { %v548_v53 = vadd.f32 %v547_v27, %v2567_v37 }
 0x11e   : > { %v1018_v35 = vpop.f32.mrf.mxu0 }
 0x121   : > { %v675_v22 = vpop.f32.mrf.mxu2 }
 0x122   : > { %v714_v60 = vadd.f32 %v675_v22, %v548_v53  ;;  %v809_v40 = vpop.f32.mrf.mxu3  ;;  %v1076_v53 = vrot.slane %v2483_v23, 1 }
 0x123   : > { %v550_v13 = vpop.f32.mrf.mxu1 }
 0x124   : > { %v848_v20 = vadd.f32 %v809_v40, %v714_v60  ;;  %v551_v61 = vadd.f32 %v550_v13, %v2578_v28 }
 0x126   : > { %v1021_v55 = vpop.f32.mrf.mxu0  ;;  %1779 = vmatmul.msk.bf16.gmra.mxu1 %vm387_vm3, %v1073_v62  ;;  %1796 = vmatmul.msk.bf16.gmra.mxu2 %vm387_vm3, %v2289_v14  ;;  %v2703_v43 = vadd.f32 %v1018_v35, %v848_v20  ;;  %v1074_v14 = vrot.slane %v2469_v6, 1 }
 0x127   : > { %1809 = vmatmul.msk.bf16.gmra.mxu3 %vm387_vm3, %v2371_v7 }
 0x128   : > { %v1075_v7 = vsel %vm582_vm4, %v1072_v16, %v1074_v14 }
 0x129   : > { %1822 = vmatmul.msk.bf16.gmra.mxu0 %vm387_vm3, %v2506_v47  ;;  %v678_v33 = vpop.f32.mrf.mxu2 }
 0x12a   : > { %v715_v37 = vadd.f32 %v678_v33, %v551_v61  ;;  %v812_v9 = vpop.f32.mrf.mxu3  ;;  %v1078_v61 = vrot.slane %v2500_v36, 1 }
 0x12b   : > { %v552_v45 = vpop.f32.mrf.mxu1 }
 0x12c   : > { %v849_v2 = vadd.f32 %v812_v9, %v715_v37 }
 0x12e   : > { %v1023_v3 = vpop.f32.mrf.mxu0  ;;  %v2710_v38 = vadd.f32 %v1021_v55, %v849_v2  ;;  %v1079_v2 = vsel %vm582_vm4, %v1076_v53, %v1078_v61 }
 0x131   : > { %v680_v58 = vpop.f32.mrf.mxu2 }
 0x132   : > { %v814_v12 = vpop.f32.mrf.mxu3 }
 0x133   : > { %v554_v4 = vpop.f32.mrf.mxu1 }
 0x134   : > { %v555_v47 = vadd.f32 %v554_v4, %v2535_v63  ;;  %v1077_v63 = vsel %vm582_vm4, %v1074_v14, %v1076_v53 }
 0x136   : > { %v1025_v26 = vpop.f32.mrf.mxu0  ;;  %1780 = vmatmul.msk.bf16.gmra.mxu1 %vm387_vm3, %v1075_v7  ;;  %1797 = vmatmul.msk.bf16.gmra.mxu2 %vm387_vm3, %v2347_v49 }
 0x137   : > { %1810 = vmatmul.msk.bf16.gmra.mxu3 %vm387_vm3, %v2419_v41 }
 0x139   : > { %1823 = vmatmul.msk.bf16.gmra.mxu0 %vm387_vm3, %v2525_v59  ;;  %v682_v6 = vpop.f32.mrf.mxu2 }
 0x13a   : > { %v716_v28 = vadd.f32 %v682_v6, %v555_v47  ;;  %v816_v48 = vpop.f32.mrf.mxu3 }
 0x13b   : > { %v556_v30 = vpop.f32.mrf.mxu1 }
 0x13c   : > { %v850_v27 = vadd.f32 %v816_v48, %v716_v28  ;;  %v557_v49 = vadd.f32 %v556_v30, %v2549_v17 }
 0x13e   : > { %v1027_v35 = vpop.f32.mrf.mxu0  ;;  %v2722_v16 = vadd.f32 %v1025_v26, %v850_v27 }
 0x141   : > { %v684_v22 = vpop.f32.mrf.mxu2 }
 0x142   : > { %v717_v60 = vadd.f32 %v684_v22, %v557_v49  ;;  %v818_v41 = vpop.f32.mrf.mxu3  ;;  %v1082_v22 = vrot.slane %v2540_v1, 1 }
 0x143   : > { %v559_v40 = vpop.f32.mrf.mxu1 }
 0x144   : > { %v851_v13 = vadd.f32 %v818_v41, %v717_v60 }
 0x146   : > { %v1030_v59 = vpop.f32.mrf.mxu0  ;;  %1781 = vmatmul.msk.bf16.gmra.mxu1 %vm387_vm3, %v1077_v63  ;;  %1798 = vmatmul.msk.bf16.gmra.mxu2 %vm387_vm3, %v2292_v15  ;;  %v2730_v62 = vadd.f32 %v1027_v35, %v851_v13 }
 0x147   : > { %1811 = vmatmul.msk.bf16.gmra.mxu3 %vm387_vm3, %v2334_v44  ;;  %v2990_v59 = vld [vmem:[#allocation5_spill] sm:$0xff] }
 0x149   : > { %1824 = vmatmul.msk.bf16.gmra.mxu0 %vm387_vm3, %v2554_v25  ;;  %v687_v23 = vpop.f32.mrf.mxu2 }
 0x14a   : > { %v821_v17 = vpop.f32.mrf.mxu3 }
 0x14b   : > { %v560_v20 = vpop.f32.mrf.mxu1 }
 0x14c   : > { %v561_v33 = vadd.f32 %v560_v20, %v2574_v34  ;;  %v2991_v20 = vld [vmem:[#allocation9_spill] sm:$0xff] }
 0x14e   : > { %v1031_v55 = vpop.f32.mrf.mxu0 }
 0x151   : > { %v688_v37 = vpop.f32.mrf.mxu2 }
 0x152   : > { %v718_v9 = vadd.f32 %v688_v37, %v561_v33  ;;  %v822_v45 = vpop.f32.mrf.mxu3 }
 0x153   : > { %v563_v15 = vpop.f32.mrf.mxu1 }
 0x154   : > { %v852_v3 = vadd.f32 %v822_v45, %v718_v9  ;;  %v564_v36 = vadd.f32 %v563_v15, %v2593_v11 }
 0x156   : > { %v1034_v14 = vpop.f32.mrf.mxu0  ;;  %1782 = vmatmul.msk.bf16.gmra.mxu1 %vm387_vm3, %v1079_v2  ;;  %1799 = vmatmul.msk.bf16.gmra.mxu2 %vm387_vm3, %v2298_v19  ;;  %v2742_v44 = vadd.f32 %v1031_v55, %v852_v3  ;;  %v1080_v19 = vrot.slane %v2517_v52, 1  ;;  %v1084_v55 = vrot.slane %v2991_v20, 1 }
 0x157   : > { %1812 = vmatmul.msk.bf16.gmra.mxu3 %vm387_vm3, %v2374_v8 }
 0x158   : > { %v1081_v8 = vsel %vm582_vm4, %v1078_v61, %v1080_v19  ;;  %v2992_v61 = vld [vmem:[#allocation10_spill] sm:$0xff]  ;;  %v1085_v15 = vsel %vm582_vm4, %v1082_v22, %v1084_v55 }
 0x159   : > { %1825 = vmatmul.msk.bf16.gmra.mxu0 %vm387_vm3, %v2581_v57  ;;  %v691_v25 = vpop.f32.mrf.mxu2 }
 0x15a   : > { %v719_v34 = vadd.f32 %v691_v25, %v564_v36  ;;  %v825_v58 = vpop.f32.mrf.mxu3  ;;  %v2994_v36 = vld [vmem:[#allocation11_spill] sm:$0xff] }
 0x15b   : > { %v565_v12 = vpop.f32.mrf.mxu1 }
 0x15c   : > { %v853_v4 = vadd.f32 %v825_v58, %v719_v34 }
 0x15e   : > { %v1036_v7 = vpop.f32.mrf.mxu0  ;;  %v2749_v26 = vadd.f32 %v1034_v14, %v853_v4  ;;  %v2993_v14 = vld [vmem:[#allocation7_spill] sm:$0xff] }
 0x161   : > { %v693_v47 = vpop.f32.mrf.mxu2 }
 0x162   : > { %v827_v6 = vpop.f32.mrf.mxu3 }
 0x163   : > { %v567_v28 = vpop.f32.mrf.mxu1 }
 0x164   : > { %v568_v57 = vadd.f32 %v567_v28, %v2537_v0  ;;  %v1083_v0 = vsel %vm582_vm4, %v1080_v19, %v1082_v22  ;;  %v2995_v19 = vld [vmem:[#allocation6_spill] sm:$0xff] }
 0x165   : > { %v1313_v47 = vshll.u32 %v2995_v19, 16 }
 0x166   : > { %v1038_v48 = vpop.f32.mrf.mxu0  ;;  %1783 = vmatmul.msk.bf16.gmra.mxu1 %vm387_vm3, %v1081_v8  ;;  %1800 = vmatmul.msk.bf16.gmra.mxu2 %vm387_vm3, %v2350_v50 }
 0x167   : > { %1813 = vmatmul.msk.bf16.gmra.mxu3 %vm387_vm3, %v2423_v42 }
 0x169   : > { %1826 = vmatmul.msk.bf16.gmra.mxu0 %vm387_vm3, %v2604_v5  ;;  %v695_v52 = vpop.f32.mrf.mxu2 }
 0x16a   : > { %v720_v11 = vadd.f32 %v695_v52, %v568_v57  ;;  %v829_v30 = vpop.f32.mrf.mxu3 }
 0x16b   : > { %v569_v27 = vpop.f32.mrf.mxu1 }
 0x16c   : > { %v854_v35 = vadd.f32 %v829_v30, %v720_v11  ;;  %v570_v50 = vadd.f32 %v569_v27, %v2551_v18  ;;  %v1433_v11 = vrot.slane %v2995_v19, 1  ;;  %v2997_v27 = vld [vmem:[#allocation8_spill] sm:$0xff] }
 0x16e   : > { %v1040_v53 = vpop.f32.mrf.mxu0  ;;  %v2761_v49 = vadd.f32 %v1038_v48, %v854_v35  ;;  %v1315_v48 = vrot.slane %v1313_v47, 1  ;;  %v1434_v22 = vsel %vm582_vm4, %v2644_v56, %v1433_v11  ;;  %v2999_v56 = vld [vmem:[#allocation16_spill] sm:$0xff]  ;;  %v2831_v47 = vld [vmem:[%s2283_s8 + $0x70] sm:$0xff] }
 0x170   : > { %v1316_v35 = vsel %vm286_vm2, %v2997_v27, %v1315_v48 }
 0x171   : > { %v697_v60 = vpop.f32.mrf.mxu2 }
 0x172   : > { %v721_v41 = vadd.f32 %v697_v60, %v570_v50  ;;  %v831_v42 = vpop.f32.mrf.mxu3  ;;  %v2998_v50 = vld [vmem:[#allocation14_spill] sm:$0xff] }
 0x173   : > { %v572_v40 = vpop.f32.mrf.mxu1 }
 0x174   : > { %v855_v63 = vadd.f32 %v831_v42, %v721_v41 }
 0x176   : > { %v1043_v5 = vpop.f32.mrf.mxu0  ;;  %1784 = vmatmul.msk.bf16.gmra.mxu1 %vm387_vm3, %v1083_v0  ;;  %1801 = vmatmul.msk.bf16.gmra.mxu2 %vm387_vm3, %v2302_v21  ;;  %v2769_v13 = vadd.f32 %v1040_v53, %v855_v63 }
 0x177   : > { %1814 = vmatmul.msk.bf16.gmra.mxu3 %vm387_vm3, %v2990_v59  ;;  %v2807_v5 = vld [vmem:[%s2963_s2] ss:$0 sm:$0xff]  ;;  %v1320_v59 = vshll.u32 %v2999_v56, 16 }
 0x179   : > { %1827 = vmatmul.msk.bf16.gmra.mxu0 %vm387_vm3, %v2625_v39  ;;  %v700_v1 = vpop.f32.mrf.mxu2 }
 0x17a   : > { %v834_v18 = vpop.f32.mrf.mxu3 }
 0x17b   : > { %v573_v23 = vpop.f32.mrf.mxu1 }
 0x17c   : > { %v574_v33 = vadd.f32 %v573_v23, %v2992_v61  ;;  %v3000_v23 = vld [vmem:[#allocation13_spill] sm:$0xff] }
 0x17e   : > { %v1044_v17 = vpop.f32.mrf.mxu0 }
 0x181   : > { %v701_v37 = vpop.f32.mrf.mxu2 }
 0x182   : > { %v722_v9 = vadd.f32 %v701_v37, %v574_v33  ;;  %v835_v45 = vpop.f32.mrf.mxu3  ;;  %v1322_v37 = vrot.slane %v1320_v59, 1 }
 0x183   : > { %v576_v21 = vpop.f32.mrf.mxu1 }
 0x184   : > { %v856_v2 = vadd.f32 %v835_v45, %v722_v9  ;;  %v577_v25 = vadd.f32 %v576_v21, %v2994_v36 }
 0x186   : > { %v1047_v3 = vpop.f32.mrf.mxu0  ;;  %1785 = vmatmul.msk.bf16.gmra.mxu1 %vm387_vm3, %v1085_v15  ;;  %1802 = vmatmul.msk.bf16.gmra.mxu2 %vm387_vm3, %v2307_v24  ;;  %v2781_v39 = vadd.f32 %v1044_v17, %v856_v2  ;;  %v2996_v24 = vld [vmem:[#allocation12_spill] sm:$0xff]  ;;  %v1088_v17 = vrot.slane %v3000_v23, 1  ;;  %v1435_v2 = vrot.slane %v2999_v56, 1 }
 0x187   : > { %1815 = vmatmul.msk.bf16.gmra.mxu3 %vm387_vm3, %v2993_v14  ;;  %v1086_v8 = vrot.slane %v2996_v24, 1 }
 0x189   : > { %1828 = vmatmul.msk.bf16.gmra.mxu0 %vm387_vm3, %v2648_v54  ;;  %v704_v34 = vpop.f32.mrf.mxu2  ;;  %v1087_v54 = vsel %vm582_vm4, %v1084_v55, %v1086_v8  ;;  %v3001_v55 = vld [vmem:[#allocation15_spill] sm:$0xff]  ;;  %v1089_v14 = vsel %vm582_vm4, %v1086_v8, %v1088_v17 }
 0x18a   : > { %v723_v58 = vadd.f32 %v704_v34, %v577_v25  ;;  %v838_v12 = vpop.f32.mrf.mxu3 }
 0x18b   : > { %v578_v4 = vpop.f32.mrf.mxu1 }
 0x18c   : > { %v857_v7 = vadd.f32 %v838_v12, %v723_v58  ;;  %v1436_v4 = vsel %vm582_vm4, %v1433_v11, %v1435_v2 }
 0x18e   : > { %v1049_v6 = vpop.f32.mrf.mxu0  ;;  %v2789_v28 = vadd.f32 %v1047_v3, %v857_v7 }
 0x191   : > { %v706_v57 = vpop.f32.mrf.mxu2 }
 0x192   : > { %v840_v52 = vpop.f32.mrf.mxu3 }
 0x193   : > { %v1142_v30 = vpop.f32.mrf.mxu1  ;;  %v1324_v52 = vshrl.u32 %v2999_v56, 16 }
 0x194   : > { %v1194_v60 = vadd.f32 %v1142_v30, %v2998_v50  ;;  %v1090_v30 = vrot.slane %v2638_v46, 1  ;;  %v219_v50 = vld [vmem:[%s2283_s8 + $0x78] sm:$0xf]  ;;  %s1843_s8 = sshll.u32 %s2143_s15, 4 }
 0x195   : > { %v1311_v59 = vunpack.c.l.b16 %v219_v50  ;;  %s1615_s7 = sadd.s32 %s1843_s8, %s1836_s6  ;;  %s2085_s8 = scalar_lea.hbm %s2964_s3, 256 }
 0x196   : > { %v1465_v53 = vpop.f32.mrf.mxu0  ;;  %1786 = vmatmul.msk.bf16.gmra.mxu1 %vm387_vm3, %v1087_v54  ;;  %1803 = vmatmul.msk.bf16.gmra.mxu2 %vm387_vm3, %v2354_v51  ;;  %v1317_v51 = vshrl.u32 %v2995_v19, 16  ;;  %v3002_v54 = vld [vmem:[#allocation17_spill] sm:$0xff]  ;;  %s1837_s9 = sshll.u32 %s1615_s7, 2 }
 0x197   : > { %1816 = vmatmul.msk.bf16.gmra.mxu3 %vm387_vm3, %v1316_v35  ;;  %v1326_v35 = vor.u32 %v1324_v52, %v1322_v37  ;;  %s1617_s10 = scalar_lea.hbm %s2964_s3, %s1837_s9 }
 0x198   : > { %v1319_v33 = vor.u32 %v1317_v51, %v1315_v48  ;;  %s1620_s20 = sshll.u32 %s1617_s10, 4  ;;  %s1621_s20 = int_to_ptr.hbm [resolvable:$true] %s1620_s20 }
 0x199   : > { %1829 = vmatmul.msk.bf16.gmra.mxu0 %vm387_vm3, %v1434_v22  ;;  %v1240_v41 = vpop.f32.mrf.mxu2  ;;  %s2079_s24 = sshra.s32 %s1621_s20, 4  ;;  %s2080_s24 = int_to_ptr.hbm [resolvable:$true] %s2079_s24 }
 0x19a   : > { %v1292_v42 = vadd.f32 %v1240_v41, %v1194_v60  ;;  %v1363_v40 = vpop.f32.mrf.mxu3  ;;  %v1323_v34 = vsel %vm286_vm2, %v1319_v33, %v1322_v37  ;;  %s2081_s27 = scalar_lea.hbm %s2080_s24, 64  ;;  %p2086_p2 = scmp.lt.s32.totalorder %s2080_s24, %s2964_s3 }
 0x19b   : > { %v1144_v0 = vpop.f32.mrf.mxu1  ;;  %p2082_p13 = scmp.ne.s32.totalorder %s2080_s24, %s2081_s27  ;;  %p2087_p4 = scmp.lt.s32.totalorder %s2085_s8, %s2081_s27 }
 0x19c   : > { %v1415_v63 = vadd.f32 %v1363_v40, %v1292_v42  ;;  %v1195_v61 = vadd.f32 %v1144_v0, %v3001_v55  ;;  %v1437_v42 = vrot.slane %v2831_v47, 1  ;;  %v1091_v0 = vsel %vm582_vm4, %v1088_v17, %v1090_v30 }
 0x19d   : > { %p2083_p0 = pnand %p2082_p13, %p2235_p3  ;;  %p2088_p5 = por %p2087_p4, %p2086_p2 }
 0x19e   : > { %v1517_v1 = vadd.f32 %v1465_v53, %v1415_v63  ;;  %v1467_v18 = vpop.f32.mrf.mxu0  ;;  %v1438_v46 = vsel %vm582_vm4, %v1435_v2, %v1437_v42 }
 0x19f   : > { %p2084_p1 = pneg %p2083_p0 }
 0x1a0   : > { %v1537_v20 = vadd.f32 %v2807_v5, %v1517_v1 }
 0x1a1   : > { %v1242_v9 = vpop.f32.mrf.mxu2  ;;  %p2089_p6 = pnand %p2088_p5, %p2084_p1 }
 0x1a2   : > { %v1553_v45 = vmax.f32 %v1537_v20, 0.0  ;;  %v1293_v21 = vadd.f32 %v1242_v9, %v1195_v61  ;;  %v1365_v15 = vpop.f32.mrf.mxu3  ;;  %v1312_v20 = vpack.c.b16 %v1311_v59, %v1311_v59 }
 0x1a3   : > { %v1147_v3 = vpop.f32.mrf.mxu1 }
 0x1a4   : > { %v1569_v36 = vpack.c.bf16 %v1553_v45, %v1553_v45  ;;  %v1416_v25 = vadd.f32 %v1365_v15, %v1293_v21  ;;  %v1335_v15 = vshll.u32 %v1312_v20, 16 }
 0x1a6   : > { %1586 = vst.msk [vmem:[%s2820_s5] sm:$0xf] %vm1585_vm5, %v1569_v36  ;;  %v1518_v58 = vadd.f32 %v1467_v18, %v1416_v25  ;;  %v1470_v12 = vpop.f32.mrf.mxu0  ;;  %1787 = vmatmul.msk.bf16.gmra.mxu1 %vm387_vm3, %v1089_v14  ;;  %1804 = vmatmul.msk.bf16.gmra.mxu2 %vm387_vm3, %v2995_v19  ;;  %v1327_v19 = vshll.u32 %v2831_v47, 16  ;;  %v1337_v25 = vrot.slane %v1335_v15, 1 }
 0x1a7   : > { %1817 = vmatmul.msk.bf16.gmra.mxu3 %vm387_vm3, %v1323_v34 }
 0x1a8   : > { %v1538_v7 = vadd.f32 %v2807_v5, %v1518_v58  ;;  %v1329_v53 = vrot.slane %v1327_v19, 1 }
 0x1a9   : > { %1830 = vmatmul.msk.bf16.gmra.mxu0 %vm387_vm3, %v1436_v4  ;;  %v1245_v6 = vpop.f32.mrf.mxu2  ;;  %v1439_v4 = vrot.slane %v1312_v20, 1 }
 0x1aa   : > { %v1554_v24 = vmax.f32 %v1538_v7, 0.0  ;;  %v1368_v8 = vpop.f32.mrf.mxu3  ;;  %v1330_v51 = vsel %vm286_vm2, %v1326_v35, %v1329_v53 }
 0x1ab   : > { %v1148_v48 = vpop.f32.mrf.mxu1 }
 0x1ac   : > { %v1570_v57 = vpack.c.bf16 %v1554_v24, %v1554_v24  ;;  %v1196_v27 = vadd.f32 %v1148_v48, %v3002_v54 }
 0x1ae   : > { %1587 = vst.msk [vmem:[%s2820_s5 + $0x4] sm:$0xf] %vm1585_vm5, %v1570_v57  ;;  %v1471_v11 = vpop.f32.mrf.mxu0 }
 0x1b1   : > { %v1246_v22 = vpop.f32.mrf.mxu2 }
 0x1b2   : > { %v1294_v60 = vadd.f32 %v1246_v22, %v1196_v27  ;;  %v1369_v41 = vpop.f32.mrf.mxu3 }
 0x1b3   : > { %v1151_v40 = vpop.f32.mrf.mxu1 }
 0x1b4   : > { %v1417_v63 = vadd.f32 %v1369_v41, %v1294_v60  ;;  %v1197_v17 = vadd.f32 %v1151_v40, %v2669_v31  ;;  %v1092_v31 = vrot.slane %v2665_v10, 1  ;;  %v1440_v10 = vsel %vm582_vm4, %v1437_v42, %v1439_v4 }
 0x1b6   : > { %v1519_v1 = vadd.f32 %v1471_v11, %v1417_v63  ;;  %v1474_v18 = vpop.f32.mrf.mxu0  ;;  %1788 = vmatmul.msk.bf16.gmra.mxu1 %vm387_vm3, %v1091_v0  ;;  %1805 = vmatmul.msk.bf16.gmra.mxu2 %vm387_vm3, %v2999_v56  ;;  %v1331_v56 = vshrl.u32 %v2831_v47, 16  ;;  %v1093_v6 = vsel %vm582_vm4, %v1090_v30, %v1092_v31 }
 0x1b7   : > { %1818 = vmatmul.msk.bf16.gmra.mxu3 %vm387_vm3, %v1330_v51 }
 0x1b8   : > { %v1539_v23 = vadd.f32 %v2807_v5, %v1519_v1  ;;  %v1333_v36 = vor.u32 %v1331_v56, %v1329_v53 }
 0x1b9   : > { %1831 = vmatmul.msk.bf16.gmra.mxu0 %vm387_vm3, %v1438_v46  ;;  %v1249_v55 = vpop.f32.mrf.mxu2 }
 0x1ba   : > { %v1555_v61 = vmax.f32 %v1539_v23, 0.0  ;;  %v1295_v33 = vadd.f32 %v1249_v55, %v1197_v17  ;;  %v1372_v37 = vpop.f32.mrf.mxu3  ;;  %v1338_v8 = vsel %vm286_vm2, %v1333_v36, %v1337_v25 }
 0x1bb   : > { %v1153_v9 = vpop.f32.mrf.mxu1 }
 0x1bc   : > { %v1571_v45 = vpack.c.bf16 %v1555_v61, %v1555_v61  ;;  %v1418_v21 = vadd.f32 %v1372_v37, %v1295_v33 }
 0x1be   : > { %1588 = vst.msk [vmem:[%s2820_s5 + $0x8] sm:$0xf] %vm1585_vm5, %v1571_v45  ;;  %v1520_v2 = vadd.f32 %v1474_v18, %v1418_v21  ;;  %v1476_v3 = vpop.f32.mrf.mxu0 }
 0x1c0   : > { %v1540_v14 = vadd.f32 %v2807_v5, %v1520_v2 }
 0x1c1   : > { %v1251_v34 = vpop.f32.mrf.mxu2 }
 0x1c2   : > { %v1556_v58 = vmax.f32 %v1540_v14, 0.0  ;;  %v1374_v12 = vpop.f32.mrf.mxu3 }
 0x1c3   : > { %v1155_v7 = vpop.f32.mrf.mxu1 }
 0x1c4   : > { %v1572_v24 = vpack.c.bf16 %v1556_v58, %v1556_v58  ;;  %v1198_v57 = vadd.f32 %v1155_v7, %v2682_v32 }
 0x1c6   : > { %1589 = vst.msk [vmem:[%s2820_s5 + $0xc] sm:$0xf] %vm1585_vm5, %v1572_v24  ;;  %v1478_v48 = vpop.f32.mrf.mxu0  ;;  %1789 = vmatmul.msk.bf16.gmra.mxu1 %vm387_vm3, %v1093_v6  ;;  %1806 = vmatmul.msk.bf16.gmra.mxu2 %vm387_vm3, %v2831_v47 }
 0x1c7   : > { %1819 = vmatmul.msk.bf16.gmra.mxu3 %vm387_vm3, %v1338_v8 }
 0x1c9   : > { %1832 = vmatmul.msk.bf16.gmra.mxu0 %vm387_vm3, %v1440_v10  ;;  %v1253_v52 = vpop.f32.mrf.mxu2 }
 0x1ca   : > { %v1296_v19 = vadd.f32 %v1253_v52, %v1198_v57  ;;  %v1376_v11 = vpop.f32.mrf.mxu3 }
 0x1cb   : > { %v1157_v30 = vpop.f32.mrf.mxu1 }
 0x1cc   : > { %v1419_v54 = vadd.f32 %v1376_v11, %v1296_v19  ;;  %v1199_v47 = vadd.f32 %v1157_v30, %v2691_v29 }
 0x1ce   : > { %v1521_v27 = vadd.f32 %v1478_v48, %v1419_v54  ;;  %v1480_v35 = vpop.f32.mrf.mxu0 }
 0x1d0   : > { %v1541_v53 = vadd.f32 %v2807_v5, %v1521_v27 }
 0x1d1   : > { %v1255_v22 = vpop.f32.mrf.mxu2 }
 0x1d2   : > { %v1557_v50 = vmax.f32 %v1541_v53, 0.0  ;;  %v1297_v60 = vadd.f32 %v1255_v22, %v1199_v47  ;;  %v1378_v41 = vpop.f32.mrf.mxu3 }
 0x1d3   : > { %v1160_v32 = vpop.f32.mrf.mxu1 }
 0x1d4   : > { %v1573_v42 = vpack.c.bf16 %v1557_v50, %v1557_v50  ;;  %v1420_v40 = vadd.f32 %v1378_v41, %v1297_v60 }
 0x1d6   : > { %1590 = vst.msk [vmem:[%s2820_s5 + $0x10] sm:$0xf] %vm1585_vm5, %v1573_v42  ;;  %v1522_v0 = vadd.f32 %v1480_v35, %v1420_v40  ;;  %v1483_v63 = vpop.f32.mrf.mxu0 }
 0x1d8   : > { %v1542_v51 = vadd.f32 %v2807_v5, %v1522_v0 }
 0x1d9   : > { %v1258_v59 = vpop.f32.mrf.mxu2 }
 0x1da   : > { %v1558_v1 = vmax.f32 %v1542_v51, 0.0  ;;  %v1381_v18 = vpop.f32.mrf.mxu3 }
 0x1db   : > { %v1161_v46 = vpop.f32.mrf.mxu1 }
 0x1dc   : > { %v1574_v23 = vpack.c.bf16 %v1558_v1, %v1558_v1  ;;  %v1200_v17 = vadd.f32 %v1161_v46, %v2703_v43 }
 0x1de   : > { %1591 = vst.msk [vmem:[%s2820_s5 + $0x14] sm:$0xf] %vm1585_vm5, %v1574_v23  ;;  %v1484_v29 = vpop.f32.mrf.mxu0 }
 0x1e1   : > { %v1259_v20 = vpop.f32.mrf.mxu2 }
 0x1e2   : > { %v1298_v55 = vadd.f32 %v1259_v20, %v1200_v17  ;;  %v1382_v61 = vpop.f32.mrf.mxu3 }
 0x1e3   : > { %v1164_v33 = vpop.f32.mrf.mxu1 }
 0x1e4   : > { %v1421_v37 = vadd.f32 %v1382_v61, %v1298_v55  ;;  %v1201_v56 = vadd.f32 %v1164_v33, %v2710_v38 }
 0x1e6   : > { %v1523_v9 = vadd.f32 %v1484_v29, %v1421_v37  ;;  %v1487_v45 = vpop.f32.mrf.mxu0 }
 0x1e8   : > { %v1543_v21 = vadd.f32 %v2807_v5, %v1523_v9 }
 0x1e9   : > { %v1262_v15 = vpop.f32.mrf.mxu2 }
 0x1ea   : > { %v1559_v2 = vmax.f32 %v1543_v21, 0.0  ;;  %v1299_v3 = vadd.f32 %v1262_v15, %v1201_v56  ;;  %v1385_v31 = vpop.f32.mrf.mxu3 }
 0x1eb   : > { %v1166_v14 = vpop.f32.mrf.mxu1 }
 0x1ec   : > { %v1575_v36 = vpack.c.bf16 %v1559_v2, %v1559_v2  ;;  %v1422_v43 = vadd.f32 %v1385_v31, %v1299_v3 }
 0x1ee   : > { %1592 = vst.msk [vmem:[%s2820_s5 + $0x18] sm:$0xf] %vm1585_vm5, %v1575_v36  ;;  %v1524_v25 = vadd.f32 %v1487_v45, %v1422_v43  ;;  %v1489_v34 = vpop.f32.mrf.mxu0 }
 0x1f0   : > { %v1544_v58 = vadd.f32 %v2807_v5, %v1524_v25 }
 0x1f1   : > { %v1264_v12 = vpop.f32.mrf.mxu2 }
 0x1f2   : > { %v1560_v4 = vmax.f32 %v1544_v58, 0.0  ;;  %v1387_v7 = vpop.f32.mrf.mxu3 }
 0x1f3   : > { %v1168_v6 = vpop.f32.mrf.mxu1 }
 0x1f4   : > { %v1576_v24 = vpack.c.bf16 %v1560_v4, %v1560_v4  ;;  %v1202_v8 = vadd.f32 %v1168_v6, %v2722_v16 }
 0x1f6   : > { %1593 = vst.msk [vmem:[%s2820_s5 + $0x1c] sm:$0xf] %vm1585_vm5, %v1576_v24  ;;  %v1491_v38 = vpop.f32.mrf.mxu0 }
 0x1f9   : > { %v1266_v48 = vpop.f32.mrf.mxu2 }
 0x1fa   : > { %v1300_v10 = vadd.f32 %v1266_v48, %v1202_v8  ;;  %v1389_v57 = vpop.f32.mrf.mxu3 }
 0x1fb   : > { %v1170_v52 = vpop.f32.mrf.mxu1 }
 0x1fc   : > { %v1423_v19 = vadd.f32 %v1389_v57, %v1300_v10  ;;  %v1203_v27 = vadd.f32 %v1170_v52, %v2730_v62 }
 0x1fe   : > { %v1525_v11 = vadd.f32 %v1491_v38, %v1423_v19  ;;  %v1493_v30 = vpop.f32.mrf.mxu0 }
 0x200   : > { %v1545_v54 = vadd.f32 %v2807_v5, %v1525_v11 }
 0x201   : > { %v1268_v35 = vpop.f32.mrf.mxu2 }
 0x202   : > { %v1561_v53 = vmax.f32 %v1545_v54, 0.0  ;;  %v1301_v47 = vadd.f32 %v1268_v35, %v1203_v27  ;;  %v1391_v22 = vpop.f32.mrf.mxu3 }
 0x203   : > { %v1173_v50 = vpop.f32.mrf.mxu1 }
 0x204   : > { %v1577_v60 = vpack.c.bf16 %v1561_v53, %v1561_v53  ;;  %v1424_v16 = vadd.f32 %v1391_v22, %v1301_v47 }
 0x206   : > { %1594 = vst.msk [vmem:[%s2820_s5 + $0x20] sm:$0xf] %vm1585_vm5, %v1577_v60  ;;  %v1526_v41 = vadd.f32 %v1493_v30, %v1424_v16  ;;  %v1496_v32 = vpop.f32.mrf.mxu0 }
 0x208   : > { %v1546_v42 = vadd.f32 %v2807_v5, %v1526_v41 }
 0x209   : > { %v1271_v40 = vpop.f32.mrf.mxu2 }
 0x20a   : > { %v1562_v0 = vmax.f32 %v1546_v42, 0.0  ;;  %v1394_v63 = vpop.f32.mrf.mxu3 }
 0x20b   : > { %v1174_v51 = vpop.f32.mrf.mxu1 }
 0x20c   : > { %v1578_v59 = vpack.c.bf16 %v1562_v0, %v1562_v0  ;;  %v1204_v1 = vadd.f32 %v1174_v51, %v2742_v44 }
 0x20e   : > { %1595 = vst.msk [vmem:[%s2820_s5 + $0x24] sm:$0xf] %vm1585_vm5, %v1578_v59  ;;  %v1497_v62 = vpop.f32.mrf.mxu0 }
 0x211   : > { %v1272_v18 = vpop.f32.mrf.mxu2 }
 0x212   : > { %v1302_v46 = vadd.f32 %v1272_v18, %v1204_v1  ;;  %v1395_v23 = vpop.f32.mrf.mxu3 }
 0x213   : > { %v1177_v29 = vpop.f32.mrf.mxu1 }
 0x214   : > { %v1425_v17 = vadd.f32 %v1395_v23, %v1302_v46  ;;  %v1205_v33 = vadd.f32 %v1177_v29, %v2749_v26 }
 0x216   : > { %v1527_v20 = vadd.f32 %v1497_v62, %v1425_v17  ;;  %v1500_v55 = vpop.f32.mrf.mxu0 }
 0x218   : > { %v1547_v61 = vadd.f32 %v2807_v5, %v1527_v20 }
 0x219   : > { %v1275_v37 = vpop.f32.mrf.mxu2 }
 0x21a   : > { %v1563_v9 = vmax.f32 %v1547_v61, 0.0  ;;  %v1303_v45 = vadd.f32 %v1275_v37, %v1205_v33  ;;  %v1398_v21 = vpop.f32.mrf.mxu3 }
 0x21b   : > { %v1179_v56 = vpop.f32.mrf.mxu1 }
 0x21c   : > { %v1579_v15 = vpack.c.bf16 %v1563_v9, %v1563_v9  ;;  %v1426_v44 = vadd.f32 %v1398_v21, %v1303_v45 }
 0x21e   : > { %1596 = vst.msk [vmem:[%s2820_s5 + $0x28] sm:$0xf] %vm1585_vm5, %v1579_v15  ;;  %v1528_v2 = vadd.f32 %v1500_v55, %v1426_v44  ;;  %v1502_v3 = vpop.f32.mrf.mxu0 }
 0x220   : > { %v1548_v31 = vadd.f32 %v2807_v5, %v1528_v2 }
 0x221   : > { %v1277_v14 = vpop.f32.mrf.mxu2 }
 0x222   : > { %v1564_v36 = vmax.f32 %v1548_v31, 0.0  ;;  %v1400_v43 = vpop.f32.mrf.mxu3 }
 0x223   : > { %v1181_v25 = vpop.f32.mrf.mxu1 }
 0x224   : > { %v1580_v34 = vpack.c.bf16 %v1564_v36, %v1564_v36  ;;  %v1206_v58 = vadd.f32 %v1181_v25, %v2761_v49 }
 0x226   : > { %1597 = vst.msk [vmem:[%s2820_s5 + $0x2c] sm:$0xf] %vm1585_vm5, %v1580_v34  ;;  %v1504_v26 = vpop.f32.mrf.mxu0 }
 0x229   : > { %v1279_v12 = vpop.f32.mrf.mxu2 }
 0x22a   : > { %v1304_v4 = vadd.f32 %v1279_v12, %v1206_v58  ;;  %v1402_v7 = vpop.f32.mrf.mxu3 }
 0x22b   : > { %v1183_v6 = vpop.f32.mrf.mxu1 }
 0x22c   : > { %v1427_v24 = vadd.f32 %v1402_v7, %v1304_v4  ;;  %v1207_v10 = vadd.f32 %v1183_v6, %v2769_v13 }
 0x22e   : > { %v1529_v38 = vadd.f32 %v1504_v26, %v1427_v24  ;;  %v1506_v8 = vpop.f32.mrf.mxu0 }
 0x230   : > { %v1549_v48 = vadd.f32 %v2807_v5, %v1529_v38 }
 0x231   : > { %v1281_v57 = vpop.f32.mrf.mxu2 }
 0x232   : > { %v1565_v52 = vmax.f32 %v1549_v48, 0.0  ;;  %v1305_v19 = vadd.f32 %v1281_v57, %v1207_v10  ;;  %v1404_v11 = vpop.f32.mrf.mxu3 }
 0x233   : > { %v1186_v30 = vpop.f32.mrf.mxu1 }
 0x234   : > { %v1581_v54 = vpack.c.bf16 %v1565_v52, %v1565_v52  ;;  %v1428_v49 = vadd.f32 %v1404_v11, %v1305_v19 }
 0x236   : > { %1598 = vst.msk [vmem:[%s2820_s5 + $0x30] sm:$0xf] %vm1585_vm5, %v1581_v54  ;;  %v1530_v27 = vadd.f32 %v1506_v8, %v1428_v49  ;;  %v1509_v35 = vpop.f32.mrf.mxu0 }
 0x238   : > { %v1550_v53 = vadd.f32 %v2807_v5, %v1530_v27 }
 0x239   : > { %v1284_v47 = vpop.f32.mrf.mxu2 }
 0x23a   : > { %v1566_v22 = vmax.f32 %v1550_v53, 0.0  ;;  %v1407_v50 = vpop.f32.mrf.mxu3 }
 0x23b   : > { %v1187_v13 = vpop.f32.mrf.mxu1 }
 0x23c   : > { %v1582_v60 = vpack.c.bf16 %v1566_v22, %v1566_v22  ;;  %v1208_v41 = vadd.f32 %v1187_v13, %v2781_v39 }
 0x23e   : > { %1599 = vst.msk [vmem:[%s2820_s5 + $0x34] sm:$0xf] %vm1585_vm5, %v1582_v60  ;;  %v1510_v16 = vpop.f32.mrf.mxu0 }
 0x241   : > { %v1285_v32 = vpop.f32.mrf.mxu2 }
 0x242   : > { %v1306_v42 = vadd.f32 %v1285_v32, %v1208_v41  ;;  %v1408_v40 = vpop.f32.mrf.mxu3 }
 0x243   : > { %v1190_v0 = vpop.f32.mrf.mxu1 }
 0x244   : > { %v1429_v63 = vadd.f32 %v1408_v40, %v1306_v42  ;;  %v1209_v1 = vadd.f32 %v1190_v0, %v2789_v28 }
 0x246   : > { %v1531_v51 = vadd.f32 %v1510_v16, %v1429_v63  ;;  %v1513_v59 = vpop.f32.mrf.mxu0 }
 0x248   : > { %v1551_v62 = vadd.f32 %v2807_v5, %v1531_v51 }
 0x249   : > { %v1288_v18 = vpop.f32.mrf.mxu2 }
 0x24a   : > { %v1567_v46 = vmax.f32 %v1551_v62, 0.0  ;;  %v1307_v23 = vadd.f32 %v1288_v18, %v1209_v1  ;;  %v1411_v39 = vpop.f32.mrf.mxu3 }
 0x24b   : > { %v1192_v29 = vpop.f32.mrf.mxu1 }
 0x24c   : > { %v1583_v17 = vpack.c.bf16 %v1567_v46, %v1567_v46  ;;  %v1430_v20 = vadd.f32 %v1411_v39, %v1307_v23 }
 0x24e   : > { %1600 = vst.msk [vmem:[%s2820_s5 + $0x38] sm:$0xf] %vm1585_vm5, %v1583_v17  ;;  %v1532_v55 = vadd.f32 %v1513_v59, %v1430_v20  ;;  %v1515_v61 = vpop.f32.mrf.mxu0 }
 0x250   : > { %v1552_v28 = vadd.f32 %v2807_v5, %v1532_v55 }
 0x251   : > { %v1290_v33 = vpop.f32.mrf.mxu2 }
 0x252   : > { %v1568_v37 = vmax.f32 %v1552_v28, 0.0  ;;  %v1413_v9 = vpop.f32.mrf.mxu3 }
 0x254   : > { %v1584_v45 = vpack.c.bf16 %v1568_v37, %v1568_v37 }
 0x256   : > { %1601 = vst.msk [vmem:[%s2820_s5 + $0x3c] sm:$0xf] %vm1585_vm5, %v1584_v45 }
 0x257   : > { %2092 = shalt.err (!%p2089_p6)
}
 0x258   : > { %s2162_s29 = smov 64   ;;  %s2163_s5 = smov 4  }
 0x259   : > { %1990 = dma.vmem_to_hbm [thread:$0]  (%p2235_p3), %s1619_s11, 1024, %s1621_s20, %s1603_s21, %s2162_s29, %s2162_s29, %s2163_s5  }
 0x25a PF: > { %p1996_p7 = scmp.ge.s32.totalorder %s2159_s19, 2  ;;  %s1635_s9 = sand.u32 1, %s2131_s12  }
 0x25b   : > { %s1636_s15 = scalar_lea.sflag [#allocation3], %s1635_s9 }
 0x25c   : > { %p1993_p9 = pnand %p1996_p7, %p2244_p8 }
 0x25e   : > { %p1994_p10 = pneg %p1993_p9 }
 0x260   : > { %2126 = dma.done.wait (%p1994_p10), %s1636_s15, 1024  }
 0x261   : > { %2128 = vsyncadd (%p1994_p10), %s1636_s15, 4294966272  ;;  %s16_s19 = sadd.s32 1, %s2159_s19   ;;  %s3003_s12 = smov %s2135_s13 }
 0x262   : > { %p13_p11 = scmp.ge.s32.totalorder %s16_s19, 6   ;;  %s3004_s13 = smov %s2139_s14 }
 0x263   : > { %s3005_s14 = smov %s2253_s30  ;;  %s3006_s15 = smov %s2151_s17 }
 0x264   : > { %s3007_s16 = smov %s2155_s18  ;;  %s3008_s17 = smov %s3011_s22 }
 0x265   : > { %s3009_s18 = smov %s3015_s23  ;;  %15 = sbr.rel (!%p13_p11) target bundleno = 5 (0x5), region = 76 }
 0x26a   :  { %1642 = vsyncpa [#allocation3], 1 }
 0x26b   :  { %1644 = vsyncpa [#allocation3 + $0x1], 1 }

</bundles_post_ra>
